<compile_context>
chip_gen: v6e
topology: v6e:2x2x1
jax: 0.10.0
libtpu: 0.0.40
codegen_flags: <defaults>
</compile_context>

<pallas_src>
import functools

import numpy as np
import jax
import jax.numpy as jnp
from jax.experimental import pallas as pl
from jax.experimental.pallas import tpu as pltpu


_BF16 = jnp.bfloat16
_LN_EPS = 1e-5

_CP = pltpu.CompilerParams(
    dimension_semantics=("parallel",),
    vmem_limit_bytes=32 * 1024 * 1024,
)


# --------------------------------------------------------------------- in-kernel helpers

def _gelu(x):
    # tanh-form GELU (EUP tanh): keeps the epilogue off the VALU.
    c = 0.7978845608028654  # sqrt(2/pi)
    return 0.5 * x * (1.0 + jnp.tanh(c * (x + 0.044715 * x * x * x)))


def _leaky(x, slope=0.01):
    return jnp.where(x >= 0.0, x, slope * x)


def _layernorm(y, g, b, eps=_LN_EPS):
    mu = jnp.mean(y, axis=-1, keepdims=True)
    yc = y - mu
    var = jnp.mean(yc * yc, axis=-1, keepdims=True)
    return yc * jax.lax.rsqrt(var + eps) * g + b


def _row_tile(m, tile=256):
    # single full block for small M (exempt from the (8,128) rule), otherwise 256-row
    # tiles with a ragged last block (all per-row math, so ragged blocks are safe).
    if m <= tile:
        return m, 1
    return tile, pl.cdiv(m, tile)


def _resident_spec(arr):
    zeros = (0,) * arr.ndim
    return pl.BlockSpec(arr.shape, lambda i, _z=zeros: _z)


# ----------------------------------------------- positional encoding: two fused kernels

def _pe_linear_kernel(h_ref, w_ref, d_ref, w1_ref, b1_ref, w2_ref, b2_ref,
                      g_ref, be_ref, o_ref, *, C):
    def part(e_ref, w):
        return jnp.dot(e_ref[...].astype(_BF16), w, preferred_element_type=jnp.float32)

    # concat([h, w, d]) @ W1  ==  h@W1[:C] + w@W1[C:2C] + d@W1[2C:]
    y = (part(h_ref, w1_ref[0:C]) + part(w_ref, w1_ref[C:2 * C])
         + part(d_ref, w1_ref[2 * C:3 * C]) + b1_ref[...])
    y = _gelu(y)
    y = jnp.dot(y.astype(_BF16), w2_ref[...], preferred_element_type=jnp.float32) + b2_ref[...]
    y = _gelu(y)
    o_ref[...] = _layernorm(y, g_ref[...], be_ref[...])


def pallas_pe_linear(h, w, d, W1, b1, W2, b2, g, be):
    M, C = h.shape
    N2 = W2.shape[1]
    tm, steps = _row_tile(M)
    row = pl.BlockSpec((tm, C), lambda i: (i, 0))
    args = [h, w, d, W1, b1.reshape(1, -1), W2, b2.reshape(1, -1),
            g.reshape(1, -1), be.reshape(1, -1)]
    in_specs = [row, row, row] + [_resident_spec(a) for a in args[3:]]
    return pl.pallas_call(
        functools.partial(_pe_linear_kernel, C=C),
        grid=(steps,),
        in_specs=in_specs,
        out_specs=pl.BlockSpec((tm, N2), lambda i: (i, 0)),
        out_shape=jax.ShapeDtypeStruct((M, N2), jnp.float32),
        compiler_params=_CP,
    )(*args)


def _pe_output_kernel(comb_ref, h_ref, w_ref, d_ref, w1_ref, b1_ref, w2_ref, b2_ref,
                      g_ref, be_ref, o_ref, *, C):
    comb = comb_ref[...]

    def branch(e_ref, w):
        e = e_ref[...]
        t = comb * e + e                                     # comb * emb + emb
        s = jnp.sum(t * t, axis=-1, keepdims=True)
        tn = t * jax.lax.rsqrt(jnp.maximum(s, 1e-24))        # == F.normalize (eps=1e-12)
        return jnp.dot(tn.astype(_BF16), w, preferred_element_type=jnp.float32)

    y = (branch(h_ref, w1_ref[0:C]) + branch(w_ref, w1_ref[C:2 * C])
         + branch(d_ref, w1_ref[2 * C:3 * C]) + b1_ref[...])
    y = _gelu(y)
    y = jnp.dot(y.astype(_BF16), w2_ref[...], preferred_element_type=jnp.float32) + b2_ref[...]
    y = _gelu(y)
    o_ref[...] = _layernorm(y, g_ref[...], be_ref[...])


def pallas_pe_output(comb, h, w, d, W1, b1, W2, b2, g, be):
    M, C = h.shape
    N2 = W2.shape[1]
    tm, steps = _row_tile(M)
    row = pl.BlockSpec((tm, C), lambda i: (i, 0))
    args = [comb, h, w, d, W1, b1.reshape(1, -1), W2, b2.reshape(1, -1),
            g.reshape(1, -1), be.reshape(1, -1)]
    in_specs = [row, row, row, row] + [_resident_spec(a) for a in args[4:]]
    return pl.pallas_call(
        functools.partial(_pe_output_kernel, C=C),
        grid=(steps,),
        in_specs=in_specs,
        out_specs=pl.BlockSpec((tm, N2), lambda i: (i, 0)),
        out_shape=jax.ShapeDtypeStruct((M, N2), jnp.float32),
        compiler_params=_CP,
    )(*args)


# --------------------------- conv2d 'same' (row-blocked) + residual + head-major epilogue

def _conv_kernel(xp_ref, w_ref, b_ref, o_ref, *, Trows, W, kh, kw, ph, pw, heads, C):
    r0 = pl.program_id(0) * Trows
    Cin = xp_ref.shape[-1]
    M = Trows * W
    acc = jnp.zeros((M, heads * C), jnp.float32)
    for ki in range(kh):                                     # static unroll, 3x3
        for kj in range(kw):
            # leading-dim dynamic start is a free address offset; the kj window is the
            # one remaining sublane-misaligned load (kj = 1, 2).
            patch = xp_ref[pl.ds(r0 + ki, Trows), pl.ds(kj, W), :]
            patch = patch.reshape(M, Cin).astype(_BF16)
            acc = acc + jnp.dot(patch, w_ref[ki, kj], preferred_element_type=jnp.float32)
    acc = acc + b_ref[...]
    # fused residual (aggregated + raw image) + head-major slab layout
    raw = xp_ref[pl.ds(r0 + ph, Trows), pl.ds(pw, W), :].reshape(M, C)
    for h in range(heads):
        o_ref[h] = acc[:, h * C:(h + 1) * C] + raw


def pallas_conv_residual_heads(img_hwc, weight_khkwio, bias, heads):
    """Conv2d(stride=1, padding='same') + per-head residual add, output (heads, H*W, C).
    grid=(H/Trows,): padded image resident in VMEM, Trows*W-row MXU streams, f32 acc."""
    H, W, Cin = img_hwc.shape
    kh, kw, _, Cout = weight_khkwio.shape
    C = Cout // heads
    ph, pw = kh // 2, kw // 2   # TODO(synk): matches padding='same' only for odd kernels
    x_pad = jnp.pad(img_hwc, ((ph, ph), (pw, pw), (0, 0)))
    Hp, Wp = H + 2 * ph, W + 2 * pw
    Trows = 8 if H % 8 == 0 else H
    steps = H // Trows
    M = Trows * W
    return pl.pallas_call(
        functools.partial(_conv_kernel, Trows=Trows, W=W, kh=kh, kw=kw,
                          ph=ph, pw=pw, heads=heads, C=C),
        grid=(steps,),
        in_specs=[pl.BlockSpec((Hp, Wp, Cin), lambda r: (0, 0, 0)),        # resident
                  pl.BlockSpec((kh, kw, Cin, Cout), lambda r: (0, 0, 0, 0)),
                  pl.BlockSpec((1, Cout), lambda r: (0, 0))],
        out_specs=pl.BlockSpec((heads, M, C), lambda r: (0, r, 0)),
        out_shape=jax.ShapeDtypeStruct((heads, H * W, C), jnp.float32),
        compiler_params=_CP,
    )(x_pad, weight_khkwio, bias.reshape(1, Cout))


# ------------------------ batched bilinear gather + fused (merged) K|V projection kernel

def _gather_kv_kernel(idx_ref, wts_ref, img_ref, w1_ref, b1_ref, w2_ref, b2_ref,
                      o_ref, samp_ref, *, Nr, slope):
    img = img_ref.at[0]                                      # (HW, C) ref view, this head
    hbase = pl.program_id(0) * (Nr * 4)
    for r in range(Nr):                                      # whole ref batch in one step
        base = hbase + 4 * r
        row = (wts_ref[base + 0] * img[pl.ds(idx_ref[base + 0], 1), :]
               + wts_ref[base + 1] * img[pl.ds(idx_ref[base + 1], 1), :]
               + wts_ref[base + 2] * img[pl.ds(idx_ref[base + 2], 1), :]
               + wts_ref[base + 3] * img[pl.ds(idx_ref[base + 3], 1), :])
        samp_ref[pl.ds(r, 1), :] = row
    x = samp_ref[...].astype(_BF16)                          # sampled fts never hit HBM
    h1 = jnp.dot(x, w1_ref[...], preferred_element_type=jnp.float32) + b1_ref[...]
    h1 = _leaky(h1, slope)
    y = jnp.dot(h1.astype(_BF16), w2_ref[...], preferred_element_type=jnp.float32) + b2_ref[...]
    o_ref[0] = _gelu(y).astype(o_ref.dtype)


def pallas_gather_kv(img_slab, idx_flat, wts_flat, W1, b1, W2, b2, heads, Nr, C,
                     slope=0.01):
    """img_slab:(heads, H*W, C) resident per head; tap indices/weights in SMEM.
    Output: fused K|V projection (heads, Nr, 2C) in bf16 (feeds the attention MXU)."""
    HW = img_slab.shape[1]
    N1 = W1.shape[1]
    N2 = W2.shape[1]
    return pl.pallas_call(
        functools.partial(_gather_kv_kernel, Nr=Nr, slope=slope),
        grid=(heads,),
        in_specs=[pl.BlockSpec(memory_space=pltpu.MemorySpace.SMEM),       # tap indices
                  pl.BlockSpec(memory_space=pltpu.MemorySpace.SMEM),       # tap weights
                  pl.BlockSpec((1, HW, C), lambda h: (h, 0, 0)),
                  pl.BlockSpec((C, N1), lambda h: (0, 0)),
                  pl.BlockSpec((1, N1), lambda h: (0, 0)),
                  pl.BlockSpec((N1, N2), lambda h: (0, 0)),
                  pl.BlockSpec((1, N2), lambda h: (0, 0))],
        out_specs=pl.BlockSpec((1, Nr, N2), lambda h: (h, 0, 0)),
        out_shape=jax.ShapeDtypeStruct((heads, Nr, N2), _BF16),
        scratch_shapes=[pltpu.VMEM((Nr, C), jnp.float32)],
        compiler_params=_CP,
    )(idx_flat, wts_flat, img_slab, W1, b1.reshape(1, -1), W2, b2.reshape(1, -1))


def bilinear_gather_params(grid_pts, H, W):
    """Tap indices/weights for F.grid_sample(mode='bilinear', align_corners=True,
    padding_mode='zeros').  Faithful to the reference module's convention: grid[...,0]
    maps to the width axis via px=(g+1)/2*(dim-1), even though the module feeds
    (y,x)-ordered coordinates clamped to [0,1]."""
    gx = grid_pts[..., 0]
    gy = grid_pts[..., 1]
    px = (gx + 1.0) * 0.5 * (W - 1)
    py = (gy + 1.0) * 0.5 * (H - 1)
    x0 = jnp.floor(px)
    y0 = jnp.floor(py)
    x1 = x0 + 1.0
    y1 = y0 + 1.0
    wx1 = px - x0
    wx0 = 1.0 - wx1
    wy1 = py - y0
    wy0 = 1.0 - wy1
    idx_taps, w_taps = [], []
    for cx, cy, wgt in ((x0, y0, wx0 * wy0), (x1, y0, wx1 * wy0),
                        (x0, y1, wx0 * wy1), (x1, y1, wx1 * wy1)):
        valid = (cx >= 0) & (cx <= W - 1) & (cy >= 0) & (cy <= H - 1)
        cxc = jnp.clip(cx, 0, W - 1).astype(jnp.int32)
        cyc = jnp.clip(cy, 0, H - 1).astype(jnp.int32)
        idx_taps.append(cyc * W + cxc)
        w_taps.append(wgt * valid.astype(jnp.float32))
    idx = jnp.stack(idx_taps, axis=-1).astype(jnp.int32)     # (heads, Nr, 4)
    wts = jnp.stack(w_taps, axis=-1).astype(jnp.float32)     # (heads, Nr, 4)
    return idx.reshape(-1), wts.reshape(-1)


# --------- attention + proj_out + final_out (head-concat folded into partial GEMMs)

def _attn_out_kernel(q_ref, kv_ref, qw1, qb1, qw2, qb2, ow1, ob1, ow2, ob2,
                     fw1, fb1, fw2, fb2, o_ref, *, heads, C, scale, slope):
    q = q_ref[...].astype(_BF16)
    q1 = _leaky(jnp.dot(q, qw1[...], preferred_element_type=jnp.float32) + qb1[...], slope)
    q2 = _gelu(jnp.dot(q1.astype(_BF16), qw2[...],
                       preferred_element_type=jnp.float32) + qb2[...]).astype(_BF16)
    acc = jnp.zeros((q.shape[0], C), jnp.float32)
    for h in range(heads):                                   # static unroll over heads
        kv = kv_ref[h]                                       # (Nr, 2C) bf16, K|V merged
        k = kv[:, 0:C]
        v = kv[:, C:2 * C]
        # TODO(synk): if Nr grows beyond VMEM budget, switch to an online-softmax
        # (flash) loop over an Nr grid axis instead of the full (Nq, Nr) score tile.
        s = jax.lax.dot_general(q2, k, (((1,), (1,)), ((), ())),
                                preferred_element_type=jnp.float32) * scale
        s = s - jnp.max(s, axis=-1, keepdims=True)
        p = jnp.exp(s)
        p = p / jnp.sum(p, axis=-1, keepdims=True)
        e = jnp.dot(p.astype(_BF16), v, preferred_element_type=jnp.float32)
        t = _leaky(jnp.dot(e.astype(_BF16), ow1[...],
                           preferred_element_type=jnp.float32) + ob1[...], slope)
        t = _gelu(jnp.dot(t.astype(_BF16), ow2[...],
                          preferred_element_type=jnp.float32) + ob2[...])
        # concat over heads folded into partial GEMMs against f_W1 row slices
        acc = acc + jnp.dot(t.astype(_BF16), fw1[h * C:(h + 1) * C],
                            preferred_element_type=jnp.float32)
    y = _leaky(acc + fb1[...], slope)
    y = jnp.dot(y.astype(_BF16), fw2[...], preferred_element_type=jnp.float32) + fb2[...]
    o_ref[...] = _leaky(y, slope)


def pallas_attention_heads_out(query, kv, mh, heads, C, scale, slope=0.01):
    Nq = query.shape[0]
    tq, steps = _row_tile(Nq)

    def b2(x):
        return x.reshape(1, -1)

    args = [query, kv,
            mh["q_W1"], b2(mh["q_b1"]), mh["q_W2"], b2(mh["q_b2"]),
            mh["o_W1"], b2(mh["o_b1"]), mh["o_W2"], b2(mh["o_b2"]),
            mh["f_W1"], b2(mh["f_b1"]), mh["f_W2"], b2(mh["f_b2"])]
    in_specs = ([pl.BlockSpec((tq, C), lambda i: (i, 0))]
                + [_resident_spec(a) for a in args[1:]])
    return pl.pallas_call(
        functools.partial(_attn_out_kernel, heads=heads, C=C, scale=scale, slope=slope),
        grid=(steps,),
        in_specs=in_specs,
        out_specs=pl.BlockSpec((tq, C), lambda i: (i, 0)),
        out_shape=jax.ShapeDtypeStruct((Nq, C), jnp.float32),
        compiler_params=_CP,
    )(*args)


# ----------------------------------------------------------------------------- glue ops

def knn_indices_fn(k, dense_pts, sparse_pts):
    """For every sparse point, indices of its k nearest dense points."""
    d2 = jnp.sum((sparse_pts[:, None, :] - dense_pts[None, :, :]) ** 2, axis=-1)
    _, idx = jax.lax.top_k(-d2, k)
    return idx                                               # (Ns, k)


# --------------------------------------------- host-side geometry (no_grad in torch code)

def get_reference_points(vox, ref_num):
    x = np.linspace(0.5, vox[0] - 0.5, ref_num[0]) / vox[0]
    y = np.linspace(0.5, vox[1] - 0.5, ref_num[1]) / vox[1]
    z = np.linspace(0.5, vox[2] - 0.5, ref_num[2]) / vox[2]
    X, Y, Z = np.meshgrid(x, y, z, indexing="ij")
    return np.stack([X, Y, Z], -1).astype(np.float32)


def image_mask_points(ref_pts, proj, pc_range, image_size):
    rp = ref_pts.copy()
    rp[..., 0] = rp[..., 0] * (pc_range[3] - pc_range[0]) + pc_range[0]
    rp[..., 1] = rp[..., 1] * (pc_range[4] - pc_range[1]) + pc_range[1]
    rp[..., 2] = rp[..., 2] * (pc_range[5] - pc_range[2]) + pc_range[2]
    hom = np.concatenate([rp, np.ones_like(rp[..., :1])], -1)
    img = np.einsum("ij,hwdj->hwdi", proj.astype(np.float32), hom.astype(np.float32))
    eps = 1e-5
    mask = img[..., 2:3] > eps
    uv = img[..., 0:2] / np.maximum(img[..., 2:3], eps)
    uv[..., 0] /= image_size[1]
    uv[..., 1] /= image_size[0]
    mask = mask & (uv[..., 1:2] > 0.0) & (uv[..., 1:2] < 1.0) & \
           (uv[..., 0:1] < 1.0) & (uv[..., 0:1] > 0.0)
    mask = mask.reshape(-1)
    uv = uv.reshape(-1, 2)
    return uv[mask][:, (1, 0)], mask, rp.reshape(-1, 3)[mask]


def process_points_relations(proposal, proj, cfg):
    ref_pts = get_reference_points(cfg["vox_size"], cfg["reference_num"])
    ref_image_pts, _, selected_ref_pts = image_mask_points(
        ref_pts, proj, cfg["pc_range"], cfg["image_size"])
    prop = proposal.reshape(cfg["vox_size"])
    indices = np.asarray(np.where(prop > 0))
    pc = cfg["pc_range"]
    vs = cfg["vox_size"]
    query_poses = np.stack([
        (indices[0] + 0.5) / vs[0] * (pc[3] - pc[0]) + pc[0],
        (indices[1] + 0.5) / vs[1] * (pc[4] - pc[1]) + pc[1],
        (indices[2] + 0.5) / vs[2] * (pc[5] - pc[2]) + pc[2],
    ], -1).astype(np.float32)
    return (ref_image_pts.astype(np.float32), selected_ref_pts.astype(np.float32),
            query_poses, indices.astype(np.int32))


# ----------------------------------------------------------------------------- modules

def learned_positional_encoding(p, poses):
    h = p["h_emb"][poses[0]]
    w = p["w_emb"][poses[1]]
    d = p["d_emb"][poses[2]]
    comb = pallas_pe_linear(h, w, d, p["lin_W1"], p["lin_b1"], p["lin_W2"], p["lin_b2"],
                            p["lin_g"], p["lin_be"])
    return pallas_pe_output(comb, h, w, d, p["out_W1"], p["out_b1"], p["out_W2"],
                            p["out_b2"], p["out_g"], p["out_be"])


def deformable_sparse_attn_3d_forward(params, cfg, img_fts, proposal_np, proj_np):
    ref_image_pts, selected_ref_pts, query_poses, indices = process_points_relations(
        proposal_np, proj_np, cfg)
    heads = cfg["heads_num"]
    C = cfg["pe_num_fts"]
    H_img, W_img = cfg["image_size"]

    indices_j = jnp.asarray(indices)
    query_fts = learned_positional_encoding(params["pe"], indices_j)     # (Nq, C) f32
    ref_image_pts_j = jnp.asarray(ref_image_pts)                         # (Nr, 2)
    query_poses_j = jnp.asarray(query_poses)                             # (Nq, 3)
    selected_ref_pts_j = jnp.asarray(selected_ref_pts)                   # (Nr, 3)
    Nq = query_poses_j.shape[0]
    Nr = selected_ref_pts_j.shape[0]

    # kNN (dense = query voxels, sparse = reference points)
    k_eff = min(cfg["k_num"], Nq)
    nei_inds = knn_indices_fn(k_eff, query_poses_j, selected_ref_pts_j)  # (Nr, k)

    # TODO(synk): PCFLayer (offset_network) source is not provided; surrogate = kNN
    # mean-pool of query features -> linear -> tanh.  Kept in XLA (output is only
    # heads*2 = 4 lanes wide, too narrow for a lane-dense Pallas store).
    pooled = jnp.mean(query_fts[nei_inds], axis=1)                       # (Nr, C)
    off = jnp.tanh(pooled @ params["off_W"] + params["off_b"]) * 0.05    # (Nr, heads*2)
    offset = off.reshape(Nr, heads, 2).transpose(1, 0, 2)                # (heads, Nr, 2)
    new_ref_pts = jnp.clip(ref_image_pts_j[None] + offset, 0.0, 1.0)     # (heads, Nr, 2)

    # image aggregation conv + raw-image residual + head-major layout (one kernel)
    img_hwc = jnp.transpose(img_fts[0, 0, 0], (1, 2, 0))                 # (H, W, C)
    img_slab = pallas_conv_residual_heads(img_hwc, params["conv_W"],
                                          params["conv_b"], heads)       # (heads, HW, C)

    # grid_sample(bilinear, align_corners=True) gather + merged K|V MLP (one kernel)
    idx_flat, wts_flat = bilinear_gather_params(new_ref_pts, H_img, W_img)
    kv = pallas_gather_kv(img_slab, idx_flat, wts_flat,
                          params["mh"]["kv_W1"], params["mh"]["kv_b1"],
                          params["mh"]["kv_W2"], params["mh"]["kv_b2"],
                          heads, Nr, C)                                  # (heads, Nr, 2C)

    # aggregation_type == 'all': proj_q + per-head attention + proj_out + final_out
    out = pallas_attention_heads_out(query_fts, kv, params["mh"], heads, C,
                                     C ** (-0.5))
    return out[None]


# ----------------------------------------------------------------------------- parameters

def init_params(key, cfg):
    C = cfg["pe_num_fts"]
    heads = cfg["heads_num"]
    ne = cfg["pe_num_emb"]
    ks = cfg["patch_scale"]
    keys = iter(jax.random.split(key, 48))

    def nrm(shape, s=0.02):
        return jax.random.normal(next(keys), shape, jnp.float32) * s

    def wbf(shape, s=0.02):
        return nrm(shape, s).astype(_BF16)                   # GEMM weights stored bf16

    pe = {
        "h_emb": nrm((ne[0], C), 1.0), "w_emb": nrm((ne[1], C), 1.0),
        "d_emb": nrm((ne[2], C), 1.0),
        "lin_W1": wbf((3 * C, 2 * C)), "lin_b1": jnp.zeros((2 * C,), jnp.float32),
        "lin_W2": wbf((2 * C, C)), "lin_b2": jnp.zeros((C,), jnp.float32),
        "lin_g": jnp.ones((C,), jnp.float32), "lin_be": jnp.zeros((C,), jnp.float32),
        "out_W1": wbf((3 * C, 2 * C)), "out_b1": jnp.zeros((2 * C,), jnp.float32),
        "out_W2": wbf((2 * C, C)), "out_b2": jnp.zeros((C,), jnp.float32),
        "out_g": jnp.ones((C,), jnp.float32), "out_be": jnp.zeros((C,), jnp.float32),
    }
    # merged K|V projections (mathematically identical to separate proj_k / proj_v).
    # TODO(synk): on v5e (128x128 MXU) keep layer 2 as two separate CxC GEMMs instead of
    # this 2Cx2C block-diagonal (half its MACs hit zeros there); merge pays off on v6e/v7x.
    k_W1, v_W1, k_W2, v_W2 = nrm((C, C)), nrm((C, C)), nrm((C, C)), nrm((C, C))
    zC = jnp.zeros((C, C), jnp.float32)
    mh = {
        "q_W1": wbf((C, C)), "q_b1": jnp.zeros((C,), jnp.float32),
        "q_W2": wbf((C, C)), "q_b2": jnp.zeros((C,), jnp.float32),
        "kv_W1": jnp.concatenate([k_W1, v_W1], axis=1).astype(_BF16),
        "kv_b1": jnp.zeros((2 * C,), jnp.float32),
        "kv_W2": jnp.concatenate(
            [jnp.concatenate([k_W2, zC], axis=1),
             jnp.concatenate([zC, v_W2], axis=1)], axis=0).astype(_BF16),
        "kv_b2": jnp.zeros((2 * C,), jnp.float32),
        "o_W1": wbf((C, C)), "o_b1": jnp.zeros((C,), jnp.float32),
        "o_W2": wbf((C, C)), "o_b2": jnp.zeros((C,), jnp.float32),
        "f_W1": wbf((heads * C, C)), "f_b1": jnp.zeros((C,), jnp.float32),
        "f_W2": wbf((C, C)), "f_b2": jnp.zeros((C,), jnp.float32),
    }
    conv_W = jnp.transpose(nrm((heads * C, C, ks, ks)), (2, 3, 1, 0)).astype(_BF16)
    return {
        "pe": pe,
        "mh": mh,
        "conv_W": conv_W,                                    # (kh, kw, Cin, Cout) bf16
        "conv_b": jnp.zeros((heads * C,), jnp.float32),
        "off_W": nrm((C, heads * 2)),
        "off_b": jnp.zeros((heads * 2,), jnp.float32),
    }


# ----------------------------------------------------------------------------- main

if __name__ == "__main__":
    cfg = dict(
        vox_size=(8, 8, 4),
        reference_num=(4, 4, 4),
        pc_range=(0.0, 0.0, 0.0, 1.0, 1.0, 1.0),
        image_size=(16, 16),
        k_num=4,
        reference_k_num=4,
        heads_num=2,
        aggregation_type="all",
        pe_num_fts=128,
        pe_num_emb=(8, 8, 8),
        patch_scale=3,
    )
    C = cfg["pe_num_fts"]
    H, W = cfg["image_size"]

    key = jax.random.PRNGKey(0)
    k_img, k_prop, k_par = jax.random.split(key, 3)

    # img_fts[0] has shape (B=1, cams=1, C, H, W); img_fts[0][0] feeds the Conv2d.
    img_fts = jax.random.normal(k_img, (1, 1, 1, C, H, W), jnp.float32)

    vx, vy, vz = cfg["vox_size"]
    proposal = (jax.random.uniform(k_prop, (vx * vy * vz,)) > 0.8).astype(jnp.float32)
    proposal = proposal.at[0].set(1.0)               # guarantee at least one query voxel
    proposal_np = np.asarray(jax.device_get(proposal))

    # 3x4 projection that keeps every reference point inside the image (and z > eps).
    proj = np.array([[0.8 * W, 0.0, 0.0, 0.1 * W],
                     [0.0, 0.8 * H, 0.0, 0.1 * H],
                     [0.0, 0.0, 0.0, 1.0]], dtype=np.float32)

    params = init_params(k_par, cfg)

    out = deformable_sparse_attn_3d_forward(params, cfg, img_fts, proposal_np, proj)
    out = jax.block_until_ready(out)

    n_q = int((proposal_np > 0).sum())
    assert out.shape == (1, n_q, C), out.shape
    assert bool(jnp.all(jnp.isfinite(out)))
    print("KERNEL_OK")
</pallas_src>

<mosaic_0001>
module attributes {stable_mosaic.version = 11 : i64} {
  func.func @_pe_linear_kernel(%arg0: i32, %arg1: memref<41x128xf32, #tpu.memory_space<vmem>>, %arg2: memref<41x128xf32, #tpu.memory_space<vmem>>, %arg3: memref<41x128xf32, #tpu.memory_space<vmem>>, %arg4: memref<384x256xbf16, #tpu.memory_space<vmem>>, %arg5: memref<1x256xf32, #tpu.memory_space<vmem>>, %arg6: memref<256x128xbf16, #tpu.memory_space<vmem>>, %arg7: memref<1x128xf32, #tpu.memory_space<vmem>>, %arg8: memref<1x128xf32, #tpu.memory_space<vmem>>, %arg9: memref<1x128xf32, #tpu.memory_space<vmem>>, %arg10: memref<41x128xf32, #tpu.memory_space<vmem>>) attributes {dimension_semantics = [#tpu.dimension_semantics<parallel>], iteration_bounds = array<i64: 1>, scalar_prefetch = 0 : i64, scratch_operands = 0 : i64, tpu.core_type = #tpu.core_type<tc>, window_params = [{transform_indices = @transform_0, window_bounds = array<i64: 41, 128>}, {transform_indices = @transform_1, window_bounds = array<i64: 41, 128>}, {transform_indices = @transform_2, window_bounds = array<i64: 41, 128>}, {pipeline_mode = #tpu.pipeline_mode<synchronous>, transform_indices = @transform_3, window_bounds = array<i64: 384, 256>}, {pipeline_mode = #tpu.pipeline_mode<synchronous>, transform_indices = @transform_4, window_bounds = array<i64: 1, 256>}, {pipeline_mode = #tpu.pipeline_mode<synchronous>, transform_indices = @transform_5, window_bounds = array<i64: 256, 128>}, {pipeline_mode = #tpu.pipeline_mode<synchronous>, transform_indices = @transform_6, window_bounds = array<i64: 1, 128>}, {pipeline_mode = #tpu.pipeline_mode<synchronous>, transform_indices = @transform_7, window_bounds = array<i64: 1, 128>}, {pipeline_mode = #tpu.pipeline_mode<synchronous>, transform_indices = @transform_8, window_bounds = array<i64: 1, 128>}, {transform_indices = @transform_9, window_bounds = array<i64: 41, 128>}]} {
    %c0 = arith.constant 0 : index
    %c0_0 = arith.constant 0 : index
    %0 = vector.load %arg4[%c0, %c0_0] : memref<384x256xbf16, #tpu.memory_space<vmem>>, vector<128x256xbf16>
    %c0_1 = arith.constant 0 : index
    %c0_2 = arith.constant 0 : index
    %1 = vector.load %arg1[%c0_1, %c0_2] : memref<41x128xf32, #tpu.memory_space<vmem>>, vector<41x128xf32>
    %2 = arith.truncf %1 : vector<41x128xf32> to vector<41x128xbf16>
    %cst = arith.constant dense<0.000000e+00> : vector<41x256xf32>
    %3 = tpu.matmul %2, %0, %cst {dimension_numbers = #tpu.dot_dimension_numbers<[1], [0], [0], [1], [0, 0, 1, 1], [], []>} : vector<41x128xbf16>, vector<128x256xbf16>, vector<41x256xf32> -> vector<41x256xf32>
    %c128 = arith.constant 128 : index
    %c0_3 = arith.constant 0 : index
    %4 = vector.load %arg4[%c128, %c0_3] : memref<384x256xbf16, #tpu.memory_space<vmem>>, vector<128x256xbf16>
    %c0_4 = arith.constant 0 : index
    %c0_5 = arith.constant 0 : index
    %5 = vector.load %arg2[%c0_4, %c0_5] : memref<41x128xf32, #tpu.memory_space<vmem>>, vector<41x128xf32>
    %6 = arith.truncf %5 : vector<41x128xf32> to vector<41x128xbf16>
    %cst_6 = arith.constant dense<0.000000e+00> : vector<41x256xf32>
    %7 = tpu.matmul %6, %4, %cst_6 {dimension_numbers = #tpu.dot_dimension_numbers<[1], [0], [0], [1], [0, 0, 1, 1], [], []>} : vector<41x128xbf16>, vector<128x256xbf16>, vector<41x256xf32> -> vector<41x256xf32>
    %8 = arith.addf %3, %7 : vector<41x256xf32>
    %c256 = arith.constant 256 : index
    %c0_7 = arith.constant 0 : index
    %9 = vector.load %arg4[%c256, %c0_7] : memref<384x256xbf16, #tpu.memory_space<vmem>>, vector<128x256xbf16>
    %c0_8 = arith.constant 0 : index
    %c0_9 = arith.constant 0 : index
    %10 = vector.load %arg3[%c0_8, %c0_9] : memref<41x128xf32, #tpu.memory_space<vmem>>, vector<41x128xf32>
    %11 = arith.truncf %10 : vector<41x128xf32> to vector<41x128xbf16>
    %cst_10 = arith.constant dense<0.000000e+00> : vector<41x256xf32>
    %12 = tpu.matmul %11, %9, %cst_10 {dimension_numbers = #tpu.dot_dimension_numbers<[1], [0], [0], [1], [0, 0, 1, 1], [], []>} : vector<41x128xbf16>, vector<128x256xbf16>, vector<41x256xf32> -> vector<41x256xf32>
    %13 = arith.addf %8, %12 : vector<41x256xf32>
    %c0_11 = arith.constant 0 : index
    %c0_12 = arith.constant 0 : index
    %14 = vector.load %arg5[%c0_11, %c0_12] : memref<1x256xf32, #tpu.memory_space<vmem>>, vector<1x256xf32>
    %15 = vector.broadcast %14 : vector<1x256xf32> to vector<41x256xf32>
    %16 = arith.addf %13, %15 : vector<41x256xf32>
    %cst_13 = arith.constant 5.000000e-01 : f32
    %17 = vector.broadcast %cst_13 : f32 to vector<41x256xf32>
    %18 = arith.mulf %17, %16 : vector<41x256xf32>
    %cst_14 = arith.constant 4.471500e-02 : f32
    %19 = vector.broadcast %cst_14 : f32 to vector<41x256xf32>
    %20 = arith.mulf %19, %16 : vector<41x256xf32>
    %21 = arith.mulf %20, %16 : vector<41x256xf32>
    %22 = arith.mulf %21, %16 : vector<41x256xf32>
    %23 = arith.addf %16, %22 : vector<41x256xf32>
    %cst_15 = arith.constant 0.797884583 : f32
    %24 = vector.broadcast %cst_15 : f32 to vector<41x256xf32>
    %25 = arith.mulf %24, %23 : vector<41x256xf32>
    %26 = math.tanh %25 : vector<41x256xf32>
    %cst_16 = arith.constant 1.000000e+00 : f32
    %27 = vector.broadcast %cst_16 : f32 to vector<41x256xf32>
    %28 = arith.addf %27, %26 : vector<41x256xf32>
    %29 = arith.mulf %18, %28 : vector<41x256xf32>
    %30 = arith.truncf %29 : vector<41x256xf32> to vector<41x256xbf16>
    %c0_17 = arith.constant 0 : index
    %c0_18 = arith.constant 0 : index
    %31 = vector.load %arg6[%c0_17, %c0_18] : memref<256x128xbf16, #tpu.memory_space<vmem>>, vector<256x128xbf16>
    %cst_19 = arith.constant dense<0.000000e+00> : vector<41x128xf32>
    %32 = tpu.matmul %30, %31, %cst_19 {dimension_numbers = #tpu.dot_dimension_numbers<[1], [0], [0], [1], [0, 0, 1, 1], [], []>} : vector<41x256xbf16>, vector<256x128xbf16>, vector<41x128xf32> -> vector<41x128xf32>
    %c0_20 = arith.constant 0 : index
    %c0_21 = arith.constant 0 : index
    %33 = vector.load %arg7[%c0_20, %c0_21] : memref<1x128xf32, #tpu.memory_space<vmem>>, vector<1x128xf32>
    %34 = vector.broadcast %33 : vector<1x128xf32> to vector<41x128xf32>
    %35 = arith.addf %32, %34 : vector<41x128xf32>
    %cst_22 = arith.constant 5.000000e-01 : f32
    %36 = vector.broadcast %cst_22 : f32 to vector<41x128xf32>
    %37 = arith.mulf %36, %35 : vector<41x128xf32>
    %cst_23 = arith.constant 4.471500e-02 : f32
    %38 = vector.broadcast %cst_23 : f32 to vector<41x128xf32>
    %39 = arith.mulf %38, %35 : vector<41x128xf32>
    %40 = arith.mulf %39, %35 : vector<41x128xf32>
    %41 = arith.mulf %40, %35 : vector<41x128xf32>
    %42 = arith.addf %35, %41 : vector<41x128xf32>
    %cst_24 = arith.constant 0.797884583 : f32
    %43 = vector.broadcast %cst_24 : f32 to vector<41x128xf32>
    %44 = arith.mulf %43, %42 : vector<41x128xf32>
    %45 = math.tanh %44 : vector<41x128xf32>
    %cst_25 = arith.constant 1.000000e+00 : f32
    %46 = vector.broadcast %cst_25 : f32 to vector<41x128xf32>
    %47 = arith.addf %46, %45 : vector<41x128xf32>
    %48 = arith.mulf %37, %47 : vector<41x128xf32>
    %c0_26 = arith.constant 0 : index
    %c0_27 = arith.constant 0 : index
    %49 = vector.load %arg8[%c0_26, %c0_27] : memref<1x128xf32, #tpu.memory_space<vmem>>, vector<1x128xf32>
    %c0_28 = arith.constant 0 : index
    %c0_29 = arith.constant 0 : index
    %50 = vector.load %arg9[%c0_28, %c0_29] : memref<1x128xf32, #tpu.memory_space<vmem>>, vector<1x128xf32>
    %cst_30 = arith.constant dense<0.000000e+00> : vector<41xf32>
    %51 = vector.multi_reduction <add>, %48, %cst_30 [1] : vector<41x128xf32> to vector<41xf32>
    %52 = vector.shape_cast %51 : vector<41xf32> to vector<41x1xf32>
    %cst_31 = arith.constant 1.280000e+02 : f32
    %53 = vector.broadcast %cst_31 : f32 to vector<41x1xf32>
    %54 = arith.divf %52, %53 : vector<41x1xf32>
    %55 = vector.broadcast %54 : vector<41x1xf32> to vector<41x128xf32>
    %56 = arith.subf %48, %55 : vector<41x128xf32>
    %57 = arith.mulf %56, %56 : vector<41x128xf32>
    %cst_32 = arith.constant dense<0.000000e+00> : vector<41xf32>
    %58 = vector.multi_reduction <add>, %57, %cst_32 [1] : vector<41x128xf32> to vector<41xf32>
    %59 = vector.shape_cast %58 : vector<41xf32> to vector<41x1xf32>
    %cst_33 = arith.constant 1.280000e+02 : f32
    %60 = vector.broadcast %cst_33 : f32 to vector<41x1xf32>
    %61 = arith.divf %59, %60 : vector<41x1xf32>
    %cst_34 = arith.constant 9.99999974E-6 : f32
    %62 = vector.broadcast %cst_34 : f32 to vector<41x1xf32>
    %63 = arith.addf %61, %62 : vector<41x1xf32>
    %64 = math.rsqrt %63 : vector<41x1xf32>
    %65 = vector.broadcast %64 : vector<41x1xf32> to vector<41x128xf32>
    %66 = arith.mulf %56, %65 : vector<41x128xf32>
    %67 = vector.broadcast %49 : vector<1x128xf32> to vector<41x128xf32>
    %68 = arith.mulf %66, %67 : vector<41x128xf32>
    %69 = vector.broadcast %50 : vector<1x128xf32> to vector<41x128xf32>
    %70 = arith.addf %68, %69 : vector<41x128xf32>
    %c0_35 = arith.constant 0 : index
    %c0_36 = arith.constant 0 : index
    %71 = vector.load %arg10[%c0_35, %c0_36] : memref<41x128xf32, #tpu.memory_space<vmem>>, vector<41x128xf32>
    tpu.vector_store %arg10[%c0_35, %c0_36], %70 {strides = array<i32>} : memref<41x128xf32, #tpu.memory_space<vmem>>, vector<41x128xf32>,
    return
  }
  func.func @transform_0(%arg0: i32) -> (i32, i32) {
    %c0_i32 = arith.constant 0 : i32
    %c0_i32_0 = arith.constant 0 : i32
    return %arg0, %c0_i32 : i32, i32
  }
  func.func @transform_1(%arg0: i32) -> (i32, i32) {
    %c0_i32 = arith.constant 0 : i32
    %c0_i32_0 = arith.constant 0 : i32
    return %arg0, %c0_i32 : i32, i32
  }
  func.func @transform_2(%arg0: i32) -> (i32, i32) {
    %c0_i32 = arith.constant 0 : i32
    %c0_i32_0 = arith.constant 0 : i32
    return %arg0, %c0_i32 : i32, i32
  }
  func.func @transform_3(%arg0: i32) -> (i32, i32) {
    %c0_i32 = arith.constant 0 : i32
    %c0_i32_0 = arith.constant 0 : i32
    %c0_i32_1 = arith.constant 0 : i32
    return %c0_i32, %c0_i32_0 : i32, i32
  }
  func.func @transform_4(%arg0: i32) -> (i32, i32) {
    %c0_i32 = arith.constant 0 : i32
    %c0_i32_0 = arith.constant 0 : i32
    %c0_i32_1 = arith.constant 0 : i32
    return %c0_i32, %c0_i32_0 : i32, i32
  }
  func.func @transform_5(%arg0: i32) -> (i32, i32) {
    %c0_i32 = arith.constant 0 : i32
    %c0_i32_0 = arith.constant 0 : i32
    %c0_i32_1 = arith.constant 0 : i32
    return %c0_i32, %c0_i32_0 : i32, i32
  }
  func.func @transform_6(%arg0: i32) -> (i32, i32) {
    %c0_i32 = arith.constant 0 : i32
    %c0_i32_0 = arith.constant 0 : i32
    %c0_i32_1 = arith.constant 0 : i32
    return %c0_i32, %c0_i32_0 : i32, i32
  }
  func.func @transform_7(%arg0: i32) -> (i32, i32) {
    %c0_i32 = arith.constant 0 : i32
    %c0_i32_0 = arith.constant 0 : i32
    %c0_i32_1 = arith.constant 0 : i32
    return %c0_i32, %c0_i32_0 : i32, i32
  }
  func.func @transform_8(%arg0: i32) -> (i32, i32) {
    %c0_i32 = arith.constant 0 : i32
    %c0_i32_0 = arith.constant 0 : i32
    %c0_i32_1 = arith.constant 0 : i32
    return %c0_i32, %c0_i32_0 : i32, i32
  }
  func.func @transform_9(%arg0: i32) -> (i32, i32) {
    %c0_i32 = arith.constant 0 : i32
    %c0_i32_0 = arith.constant 0 : i32
    return %arg0, %c0_i32 : i32, i32
  }
}

</mosaic_0001>

<bundles_post_ra>
// kernel: tpu_custom_call.1
= control target key start
LH: loop header
LB: loop body
LE: loop exit
PB: predicated region body
PF: predicated region fallthrough
CT: control target
= control target key end

     0   :  { %14 = vsyncpa [#allocation3], 0  ;;  %s1729_s0 = inlined_call_operand.hbm [shape: f32[41,128], index: 0, kind: input, shape index: {}]   ;;  %s1730_s1 = inlined_call_operand.hbm [shape: f32[41,128], index: 1, kind: input, shape index: {}]   ;;  %s1731_s2 = inlined_call_operand.hbm [shape: f32[41,128], index: 2, kind: input, shape index: {}]   ;;  %s1732_s3 = inlined_call_operand.hbm [shape: bf16[384,256], index: 3, kind: input, shape index: {}]   ;;  %s1733_s4 = inlined_call_operand.vmem [shape: f32[1,256], index: 4, kind: input, shape index: {}]   ;;  %s1734_s5 = inlined_call_operand.hbm [shape: bf16[256,128], index: 5, kind: input, shape index: {}]   ;;  %s1735_s6 = inlined_call_operand.vmem [shape: f32[1,128], index: 6, kind: input, shape index: {}]   ;;  %s1736_s7 = inlined_call_operand.vmem [shape: f32[1,128], index: 7, kind: input, shape index: {}]   ;;  %s1737_s8 = inlined_call_operand.vmem [shape: f32[1,128], index: 8, kind: input, shape index: {}]   ;;  %s1738_s9 = inlined_call_operand.hbm [shape: f32[41,128], index: 9, kind: output, shape index: {}]  }
   0x1   :  { %15 = vsyncpa [#allocation6], 0 }
   0x2   :  { %16 = vsyncpa [#allocation9], 0 }
   0x3   :  { %17 = vsyncpa [#allocation4], 0  ;;  %s1499_s30 = smov [#allocation5]   ;;  %s1500_s11 = smov [#allocation8]  }
   0x4   :  { %s35_s10 = sshll.u32 %s1499_s30, 4  ;;  %s59_s12 = sshll.u32 %s1500_s11, 4  ;;  %s36_s10 = int_to_ptr.vmem [resolvable:$true] %s35_s10  ;;  %s60_s12 = int_to_ptr.vmem [resolvable:$true] %s59_s12 }
   0x5   :  { %s1379_s13 = scalar_lea.vmem %s36_s10, 768  ;;  %p1384_p1 = scmp.lt.s32.totalorder %s36_s10, %s36_s10 }
   0x6   :  { %p1380_p0 = scmp.ne.s32.totalorder %s36_s10, %s1379_s13  ;;  %p1385_p2 = scmp.lt.s32.totalorder %s1379_s13, %s1379_s13 }
   0x8   :  { %p1386_p3 = por %p1385_p2, %p1384_p1 }
   0xa   :  { %p1387_p4 = pnand %p1386_p3, %p1380_p0 }
   0xc   :  { %1390 = shalt.err (!%p1387_p4)
}
   0xd   :  { %s1501_s14 = smov 128   ;;  %s1502_s15 = smov 8  }
   0xe   :  { %41 = dma.hbm_to_vmem [thread:$0]  %s1730_s1, 768, %s36_s10, [#allocation6], %s1501_s14, %s1501_s14, %s1502_s15  }
   0xf   :  { %s1399_s18 = scalar_lea.vmem %s60_s12, 6144  ;;  %p1404_p6 = scmp.lt.s32.totalorder %s60_s12, %s60_s12 }
  0x10   :  { %p1400_p5 = scmp.ne.s32.totalorder %s60_s12, %s1399_s18  ;;  %p1405_p7 = scmp.lt.s32.totalorder %s1399_s18, %s1399_s18 }
  0x12   :  { %p1406_p8 = por %p1405_p7, %p1404_p6 }
  0x14   :  { %p1407_p9 = pnand %p1406_p8, %p1400_p5 }
  0x16   :  { %1410 = shalt.err (!%p1407_p9)
}
  0x17   :  { %65 = dma.hbm_to_vmem [thread:$0]  %s1732_s3, 6144, %s60_s12, [#allocation9], %s1501_s14, %s1501_s14, %s1502_s15  }
  0x18   :  { %s1503_s21 = smov [#allocation2]   ;;  %s1504_s23 = smov [#allocation7]  }
  0x19   :  { %s23_s22 = sshll.u32 %s1503_s21, 4  ;;  %s47_s24 = sshll.u32 %s1504_s23, 4  ;;  %s24_s22 = int_to_ptr.vmem [resolvable:$true] %s23_s22  ;;  %s48_s24 = int_to_ptr.vmem [resolvable:$true] %s47_s24 }
  0x1a   :  { %s1419_s1 = scalar_lea.vmem %s24_s22, 768  ;;  %p1424_p11 = scmp.lt.s32.totalorder %s24_s22, %s24_s22 }
  0x1b   :  { %p1420_p10 = scmp.ne.s32.totalorder %s24_s22, %s1419_s1  ;;  %p1425_p12 = scmp.lt.s32.totalorder %s1419_s1, %s1419_s1 }
  0x1d   :  { %p1426_p13 = por %p1425_p12, %p1424_p11 }
  0x1f   :  { %p1427_p0 = pnand %p1426_p13, %p1420_p10 }
  0x21   :  { %1430 = shalt.err (!%p1427_p0)
}
  0x22   :  { %29 = dma.hbm_to_vmem [thread:$0]  %s1729_s0, 768, %s24_s22, [#allocation3], %s1501_s14, %s1501_s14, %s1502_s15  }
  0x23   :  { %s1439_s3 = scalar_lea.vmem %s48_s24, 768  ;;  %p1444_p2 = scmp.lt.s32.totalorder %s48_s24, %s48_s24 }
  0x24   :  { %p1440_p1 = scmp.ne.s32.totalorder %s48_s24, %s1439_s3  ;;  %p1445_p3 = scmp.lt.s32.totalorder %s1439_s3, %s1439_s3 }
  0x26   :  { %p1446_p4 = por %p1445_p3, %p1444_p2 }
  0x28   :  { %p1447_p5 = pnand %p1446_p4, %p1440_p1 }
  0x2a   :  { %1450 = shalt.err (!%p1447_p5)
}
  0x2b   :  { %53 = dma.hbm_to_vmem [thread:$0]  %s1731_s2, 768, %s48_s24, [#allocation6], %s1501_s14, %s1501_s14, %s1502_s15  }
  0x2c   :  { %s1505_s29 = smov [#allocation10]  }
  0x2d   :  { %s73_s30 = sshll.u32 %s1505_s29, 4  ;;  %s74_s30 = int_to_ptr.vmem [resolvable:$true] %s73_s30 }
  0x2e   :  { %s1459_s10 = scalar_lea.vmem %s74_s30, 2048  ;;  %p1464_p7 = scmp.lt.s32.totalorder %s74_s30, %s74_s30 }
  0x2f   :  { %p1460_p6 = scmp.ne.s32.totalorder %s74_s30, %s1459_s10  ;;  %p1465_p8 = scmp.lt.s32.totalorder %s1459_s10, %s1459_s10 }
  0x31   :  { %p1466_p9 = por %p1465_p8, %p1464_p7 }
  0x33   :  { %p1467_p10 = pnand %p1466_p9, %p1460_p6 }
  0x35   :  { %1470 = shalt.err (!%p1467_p10)
}
  0x36   :  { %s1506_s0 = smov 64   ;;  %s1507_s11 = smov 4  }
  0x37   :  { %79 = dma.hbm_to_vmem [thread:$0]  %s1734_s5, 2048, %s74_s30, [#allocation9], %s1506_s0, %s1506_s0, %s1507_s11  }
  0x38   :  { %1491 = dma.done.wait [#allocation3], 768  }
  0x39   :  { %1492 = vsyncadd [#allocation3], 4294966528 }
  0x3a   :  { %1493 = dma.done.wait [#allocation6], 1536  }
  0x3b   :  { %1494 = vsyncadd [#allocation6], 4294965760 }
  0x3c   :  { %1495 = dma.done.wait [#allocation9], 8192  }
  0x3d   :  { %1496 = vsyncadd [#allocation9], 4294959104  ;;  %v1508_v0 = vmov 0   ;;  %v1235_v1 = vld [vmem:[#allocation8 + $0xf4] ss:$8 sps:$4 sm:$0xff]   ;;  %v143_v33 = vld [vmem:[#allocation5] sm:$0xff] }
  0x3e   :  { %264 = vmatprep.mubr.bf16.mxu0 %v1508_v0  ;;  %407 = vmatprep.mubr.bf16.mxu1 %v1508_v0  ;;  %v1237_v2 = vld [vmem:[#allocation8 + $0x74] ss:$8 sps:$4 sm:$0xff]   ;;  %v1239_v3 = vld [vmem:[#allocation8 + $0xf0] ss:$8 sps:$4 sm:$0xff]   ;;  %v1241_v5 = vld [vmem:[#allocation8 + $0xe4] ss:$8 sps:$4 sm:$0xff]  }
  0x3f   :  { %232 = vmatprep.subr.bf16.mxu0 %v1235_v1  ;;  %v1240_v4 = vld [vmem:[#allocation8 + $0x70] ss:$8 sps:$4 sm:$0xff]   ;;  %375 = vmatprep.subr.bf16.mxu1 %v1237_v2  ;;  %v1243_v6 = vld [vmem:[#allocation8 + $0x64] ss:$8 sps:$4 sm:$0xff]   ;;  %v1245_v7 = vld [vmem:[#allocation8 + $0xe0] ss:$8 sps:$4 sm:$0xff]  }
  0x40   :  { %233 = vmatpush1.bf16.msra.mxu0 %v1239_v3  ;;  %376 = vmatpush1.bf16.msra.mxu1 %v1240_v4  ;;  %v1246_v8 = vld [vmem:[#allocation8 + $0x60] ss:$8 sps:$4 sm:$0xff]   ;;  %v1247_v9 = vld [vmem:[#allocation8 + $0xd4] ss:$8 sps:$4 sm:$0xff]   ;;  %v1251_v11 = vld [vmem:[#allocation8 + $0xd0] ss:$8 sps:$4 sm:$0xff]  }
  0x41   :  { %234 = vmatprep.subr.bf16.mxu0 %v1241_v5  ;;  %377 = vmatprep.subr.bf16.mxu1 %v1243_v6  ;;  %v1249_v10 = vld [vmem:[#allocation8 + $0x54] ss:$8 sps:$4 sm:$0xff]   ;;  %v1252_v12 = vld [vmem:[#allocation8 + $0x50] ss:$8 sps:$4 sm:$0xff]   ;;  %v1253_v13 = vld [vmem:[#allocation8 + $0xc4] ss:$8 sps:$4 sm:$0xff]  }
  0x42   :  { %v1255_v14 = vld [vmem:[#allocation8 + $0x44] ss:$8 sps:$4 sm:$0xff]   ;;  %v1257_v15 = vld [vmem:[#allocation8 + $0xc0] ss:$8 sps:$4 sm:$0xff]   ;;  %v1259_v17 = vld [vmem:[#allocation8 + $0xb4] ss:$8 sps:$4 sm:$0xff]  }
  0x43   :  { %v1258_v16 = vld [vmem:[#allocation8 + $0x40] ss:$8 sps:$4 sm:$0xff]   ;;  %v1261_v18 = vld [vmem:[#allocation8 + $0x34] ss:$8 sps:$4 sm:$0xff]   ;;  %v1263_v19 = vld [vmem:[#allocation8 + $0xb0] ss:$8 sps:$4 sm:$0xff]  }
  0x44   :  { %235 = vmatpush1.bf16.msra.mxu0 %v1245_v7  ;;  %378 = vmatpush1.bf16.msra.mxu1 %v1246_v8  ;;  %v1264_v20 = vld [vmem:[#allocation8 + $0x30] ss:$8 sps:$4 sm:$0xff]   ;;  %v1265_v21 = vld [vmem:[#allocation8 + $0xa4] ss:$8 sps:$4 sm:$0xff]   ;;  %v1269_v23 = vld [vmem:[#allocation8 + $0xa0] ss:$8 sps:$4 sm:$0xff]  }
  0x45   :  { %236 = vmatprep.subr.bf16.mxu0 %v1247_v9  ;;  %379 = vmatprep.subr.bf16.mxu1 %v1249_v10  ;;  %v1267_v22 = vld [vmem:[#allocation8 + $0x24] ss:$8 sps:$4 sm:$0xff]   ;;  %v1270_v24 = vld [vmem:[#allocation8 + $0x20] ss:$8 sps:$4 sm:$0xff]   ;;  %v1271_v25 = vld [vmem:[#allocation8 + $0x94] ss:$8 sps:$4 sm:$0xff]  }
  0x46   :  { %v1273_v26 = vld [vmem:[#allocation8 + $0x14] ss:$8 sps:$4 sm:$0xff]   ;;  %v1275_v27 = vld [vmem:[#allocation8 + $0x90] ss:$8 sps:$4 sm:$0xff]   ;;  %v1277_v29 = vld [vmem:[#allocation8 + $0x84] ss:$8 sps:$4 sm:$0xff]  }
  0x47   :  { %v1276_v28 = vld [vmem:[#allocation8 + $0x10] ss:$8 sps:$4 sm:$0xff]   ;;  %v1279_v30 = vld [vmem:[#allocation8 + $0x4] ss:$8 sps:$4 sm:$0xff]   ;;  %v1281_v31 = vld [vmem:[#allocation8 + $0x80] ss:$8 sps:$4 sm:$0xff]  }
  0x48   :  { %237 = vmatpush1.bf16.msra.mxu0 %v1251_v11  ;;  %380 = vmatpush1.bf16.msra.mxu1 %v1252_v12  ;;  %v1282_v32 = vld [vmem:[#allocation8] ss:$8 sps:$4 sm:$0xff]   ;;  %v118_v35 = vld [vmem:[#allocation2] sm:$0xff]  ;;  %v119_v36 = vld [vmem:[#allocation2 + $0x8] sm:$0xff]  ;;  %vm1014_vm0 = vcmask 1040384  }
  0x49   :  { %238 = vmatprep.subr.bf16.mxu0 %v1253_v13  ;;  %381 = vmatprep.subr.bf16.mxu1 %v1255_v14  ;;  %v144_v34 = vld [vmem:[#allocation5 + $0x8] sm:$0xff]  ;;  %v1285_v37 = vld [vmem:[#allocation8 + $0x174] ss:$8 sps:$4 sm:$0xff]   ;;  %v124_v39 = vpack.c.bf16 %v119_v36, %v118_v35  ;;  %v1283_v40 = vld [vmem:[#allocation8 + $0x170] ss:$8 sps:$4 sm:$0xff]  }
  0x4a   :  { %v149_v38 = vpack.c.bf16 %v144_v34, %v143_v33  ;;  %v1288_v41 = vld [vmem:[#allocation8 + $0x164] ss:$8 sps:$4 sm:$0xff]   ;;  %v1286_v42 = vld [vmem:[#allocation8 + $0x160] ss:$8 sps:$4 sm:$0xff]   ;;  %v145_v43 = vld [vmem:[#allocation5 + $0x10] sm:$0xff] }
  0x4b   :  { %v146_v44 = vld [vmem:[#allocation5 + $0x18] sm:$0xff]  ;;  %v120_v45 = vld [vmem:[#allocation2 + $0x10] sm:$0xff]  ;;  %v121_v46 = vld [vmem:[#allocation2 + $0x18] sm:$0xff] }
  0x4c   :  { %239 = vmatpush1.bf16.msra.mxu0 %v1257_v15  ;;  %382 = vmatpush1.bf16.msra.mxu1 %v1258_v16  ;;  %v1291_v47 = vld [vmem:[#allocation8 + $0x154] ss:$8 sps:$4 sm:$0xff]   ;;  %v1289_v48 = vld [vmem:[#allocation8 + $0x150] ss:$8 sps:$4 sm:$0xff]   ;;  %v150_v49 = vpack.c.bf16 %v146_v44, %v145_v43  ;;  %v125_v50 = vpack.c.bf16 %v121_v46, %v120_v45  ;;  %v1294_v51 = vld [vmem:[#allocation8 + $0x144] ss:$8 sps:$4 sm:$0xff]  }
  0x4d   :  { %240 = vmatprep.subr.bf16.mxu0 %v1259_v17  ;;  %383 = vmatprep.subr.bf16.mxu1 %v1261_v18  ;;  %v1292_v52 = vld [vmem:[#allocation8 + $0x140] ss:$8 sps:$4 sm:$0xff]   ;;  %v122_v55 = vld [vmem:[#allocation2 + $0x20] sm:$0xff]  ;;  %v123_v56 = vld [vmem:[#allocation2 + $0x28] sm:$0x1] }
  0x4e   :  { %v147_v53 = vld [vmem:[#allocation5 + $0x20] sm:$0xff]  ;;  %v148_v54 = vld [vmem:[#allocation5 + $0x28] sm:$0x1]  ;;  %v1297_v57 = vld [vmem:[#allocation8 + $0x134] ss:$8 sps:$4 sm:$0xff]   ;;  %v126_v59 = vpack.c.bf16 %v123_v56, %v122_v55 }
  0x4f   :  { %v151_v58 = vpack.c.bf16 %v148_v54, %v147_v53  ;;  %v1295_v60 = vld [vmem:[#allocation8 + $0x130] ss:$8 sps:$4 sm:$0xff]   ;;  %v1300_v61 = vld [vmem:[#allocation8 + $0x124] ss:$8 sps:$4 sm:$0xff]   ;;  %v1298_v62 = vld [vmem:[#allocation8 + $0x120] ss:$8 sps:$4 sm:$0xff]  }
  0x50   :  { %241 = vmatpush1.bf16.msra.mxu0 %v1263_v19  ;;  %384 = vmatpush1.bf16.msra.mxu1 %v1264_v20  ;;  %v1303_v63 = vld [vmem:[#allocation8 + $0x114] ss:$8 sps:$4 sm:$0xff]   ;;  %v1301_v1 = vld [vmem:[#allocation8 + $0x110] ss:$8 sps:$4 sm:$0xff]   ;;  %v1306_v2 = vld [vmem:[#allocation8 + $0x104] ss:$8 sps:$4 sm:$0xff]  }
  0x51   :  { %242 = vmatprep.subr.bf16.mxu0 %v1265_v21  ;;  %385 = vmatprep.subr.bf16.mxu1 %v1267_v22  ;;  %v1304_v3 = vld [vmem:[#allocation8 + $0x100] ss:$8 sps:$4 sm:$0xff]   ;;  %v454_v4 = vld [vmem:[#allocation7] sm:$0xff]  ;;  %v455_v5 = vld [vmem:[#allocation7 + $0x8] sm:$0xff] }
  0x52   :  { %v460_v6 = vpack.c.bf16 %v455_v5, %v454_v4  ;;  %v456_v7 = vld [vmem:[#allocation7 + $0x10] sm:$0xff]  ;;  %v457_v8 = vld [vmem:[#allocation7 + $0x18] sm:$0xff]  ;;  %v458_v10 = vld [vmem:[#allocation7 + $0x20] sm:$0xff] }
  0x53   :  { %v461_v9 = vpack.c.bf16 %v457_v8, %v456_v7  ;;  %v459_v11 = vld [vmem:[#allocation7 + $0x28] sm:$0x1]  ;;  %v1309_v15 = vld [vmem:[#allocation10 + $0x70] sm:$0xff]   ;;  %v1311_v17 = vld [vmem:[#allocation10 + $0x68] sm:$0xff]  }
  0x54   :  { %243 = vmatpush1.bf16.msra.mxu0 %v1269_v23  ;;  %386 = vmatpush1.bf16.msra.mxu1 %v1270_v24  ;;  %v462_v12 = vpack.c.bf16 %v459_v11, %v458_v10  ;;  %v1307_v13 = vld [vmem:[#allocation10 + $0x78] sm:$0xff]   ;;  %v1310_v16 = vld [vmem:[#allocation10 + $0x30] sm:$0xff]   ;;  %v1312_v18 = vld [vmem:[#allocation10 + $0x28] sm:$0xff]  }
  0x55   :  { %244 = vmatprep.subr.bf16.mxu0 %v1271_v25  ;;  %387 = vmatprep.subr.bf16.mxu1 %v1273_v26  ;;  %v1308_v14 = vld [vmem:[#allocation10 + $0x38] sm:$0xff]   ;;  %v1313_v19 = vld [vmem:[#allocation10 + $0x60] sm:$0xff]   ;;  %v1317_v22 = vld [vmem:[#allocation10 + $0x50] sm:$0xff]  }
  0x56   :  { %v1314_v20 = vld [vmem:[#allocation10 + $0x20] sm:$0xff]   ;;  %v1316_v21 = vld [vmem:[#allocation10 + $0x18] sm:$0xff]   ;;  %v1318_v23 = vld [vmem:[#allocation10 + $0x10] sm:$0xff]  }
  0x57   :  { %v1319_v24 = vld [vmem:[#allocation10 + $0x48] sm:$0xff]   ;;  %v1321_v26 = vld [vmem:[#allocation10 + $0x40] sm:$0xff]  }
  0x58   :  { %245 = vmatpush1.bf16.msra.mxu0 %v1275_v27  ;;  %388 = vmatpush1.bf16.msra.mxu1 %v1276_v28  ;;  %v1320_v25 = vld [vmem:[#allocation10 + $0x8] sm:$0xff]   ;;  %v1322_v27 = vld [vmem:[#allocation10] sm:$0xff]  }
  0x59   :  { %246 = vmatprep.subr.bf16.mxu0 %v1277_v29  ;;  %389 = vmatprep.subr.bf16.mxu1 %v1279_v30 }
  0x5c   :  { %247 = vmatpush1.bf16.msra.mxu0 %v1281_v31  ;;  %390 = vmatpush1.bf16.msra.mxu1 %v1282_v32 }
  0x5d   :  { %543 = vmatprep.subr.bf16.mxu0 %v1285_v37  ;;  %1190 = vmatprep.subr.bf16.mxu1 %v1307_v13 }
  0x5f   :  { %265 = vmatmul.mubr.bf16.vlgmr.msra.gmra.mxu0 %v149_v38  ;;  %408 = vmatmul.mubr.bf16.vlgmr.msra.gmra.mxu1 %v124_v39 }
  0x60   :  { %544 = vmatpush1.bf16.msra.mxu0 %v1283_v40  ;;  %274 = vmatprep.mubr.bf16.mxu0 %v1508_v0  ;;  %v620_v40 = vlaneseq }
  0x61   :  { %545 = vmatprep.subr.bf16.mxu0 %v1288_v41  ;;  %417 = vmatprep.mubr.bf16.mxu1 %v1508_v0 }
  0x62   :  { %1191 = vmatpush3.bf16.msra.mxu1 %v1308_v14  ;;  %v621_v44 = vshrl.u32 %v620_v40, 7 }
  0x63   :  { %1192 = vmatprep.subr.bf16.mxu1 %v1309_v15 }
  0x64   :  { %546 = vmatpush1.bf16.msra.mxu0 %v1286_v42 }
  0x65   :  { %547 = vmatprep.subr.bf16.mxu0 %v1291_v47  ;;  %v622_v47 = vsub.s32 0, %v621_v44 }
  0x66   :  { %1193 = vmatpush3.bf16.msra.mxu1 %v1310_v16 }
  0x67   :  { %275 = vmatmul.mubr.bf16.gmra.mxu0 %v150_v49  ;;  %418 = vmatmul.mubr.bf16.gmra.mxu1 %v125_v50  ;;  %v626_v49 = vsub.s32 1, %v621_v44 }
  0x68   :  { %548 = vmatpush1.bf16.msra.mxu0 %v1289_v48  ;;  %284 = vmatprep.mubr.bf16.mxu0 %v1508_v0  ;;  %v618_v48 = vld [vmem:[%s1733_s4] sm:$0x3] }
  0x69   :  { %549 = vmatprep.subr.bf16.mxu0 %v1294_v51  ;;  %427 = vmatprep.mubr.bf16.mxu1 %v1508_v0  ;;  %v1603_v53 = vrot.slane %v618_v48, %v622_v47 }
  0x6a   :  { %1194 = vmatprep.subr.bf16.mxu1 %v1311_v17 }
  0x6b   :  { %1195 = vmatpush3.bf16.msra.mxu1 %v1312_v18 }
  0x6c   :  { %550 = vmatpush1.bf16.msra.mxu0 %v1292_v52  ;;  %1196 = vmatprep.subr.bf16.mxu1 %v1313_v19 }
  0x6d   :  { %551 = vmatprep.subr.bf16.mxu0 %v1297_v57  ;;  %v1605_v57 = vrot.slane %v618_v48, %v626_v49 }
  0x6f   :  { %285 = vmatmul.mubr.bf16.gmra.mxu0 %v151_v58  ;;  %428 = vmatmul.mubr.bf16.gmra.mxu1 %v126_v59 }
  0x70   :  { %552 = vmatpush1.bf16.msra.mxu0 %v1295_v60  ;;  %575 = vmatprep.mubr.bf16.mxu0 %v1508_v0 }
  0x71   :  { %553 = vmatprep.subr.bf16.mxu0 %v1300_v61  ;;  %1197 = vmatpush3.bf16.msra.mxu1 %v1314_v20 }
  0x74   :  { %554 = vmatpush1.bf16.msra.mxu0 %v1298_v62 }
  0x75   :  { %555 = vmatprep.subr.bf16.mxu0 %v1303_v63 }
  0x78   :  { %556 = vmatpush1.bf16.msra.mxu0 %v1301_v1 }
  0x79   :  { %557 = vmatprep.subr.bf16.mxu0 %v1306_v2 }
  0x7c   :  { %558 = vmatpush1.bf16.msra.mxu0 %v1304_v3 }
  0x7f   :  { %576 = vmatmul.mubr.bf16.vlgmr.msra.gmra.mxu0 %v460_v6 }
  0x80   :  { %585 = vmatprep.mubr.bf16.mxu0 %v1508_v0 }
  0x87   :  { %586 = vmatmul.mubr.bf16.gmra.mxu0 %v461_v9 }
  0x88   :  { %595 = vmatprep.mubr.bf16.mxu0 %v1508_v0  ;;  %v1315_v0 = vld [vmem:[#allocation10 + $0x58] sm:$0xff]  }
  0x89   :  { %1198 = vmatprep.subr.bf16.mxu1 %v1315_v0 }
  0x8a   :  { %1199 = vmatpush3.bf16.msra.mxu1 %v1316_v21 }
  0x8b   :  { %1200 = vmatprep.subr.bf16.mxu1 %v1317_v22 }
  0x8e   :  { %1201 = vmatpush3.bf16.msra.mxu1 %v1318_v23 }
  0x8f   :  { %596 = vmatmul.mubr.bf16.gmra.mxu0 %v462_v12  ;;  %1202 = vmatprep.subr.bf16.mxu1 %v1319_v24 }
  0x92   :  { %1203 = vmatpush3.bf16.msra.mxu1 %v1320_v25 }
  0x93   :  { %1204 = vmatprep.subr.bf16.mxu1 %v1321_v26 }
  0x96   :  { %1205 = vmatpush3.bf16.msra.mxu1 %v1322_v27 }
 0x11f   :  { %v266_v28 = vpop.f32.mrf.mxu0  ;;  %v409_v32 = vpop.f32.mrf.mxu1 }
 0x120   :  { %v410_v52 = vadd.f32 %v409_v32, %v266_v28 }
 0x121   :  { %v268_v29 = vpop.f32.mrf.mxu0  ;;  %v411_v35 = vpop.f32.mrf.mxu1 }
 0x122   :  { %v412_v55 = vadd.f32 %v411_v35, %v268_v29 }
 0x123   :  { %v270_v30 = vpop.f32.mrf.mxu0  ;;  %v413_v38 = vpop.f32.mrf.mxu1 }
 0x124   :  { %v414_v60 = vadd.f32 %v413_v38, %v270_v30 }
 0x125   :  { %v272_v31 = vpop.f32.mrf.mxu0  ;;  %v415_v41 = vpop.f32.mrf.mxu1 }
 0x126   :  { %v416_v1 = vadd.f32 %v415_v41, %v272_v31 }
 0x127   :  { %v276_v33 = vpop.f32.mrf.mxu0  ;;  %v419_v42 = vpop.f32.mrf.mxu1 }
 0x128   :  { %v420_v11 = vadd.f32 %v419_v42, %v276_v33 }
 0x129   :  { %v278_v34 = vpop.f32.mrf.mxu0  ;;  %v421_v45 = vpop.f32.mrf.mxu1 }
 0x12a   :  { %v422_v13 = vadd.f32 %v421_v45, %v278_v34 }
 0x12b   :  { %v280_v36 = vpop.f32.mrf.mxu0  ;;  %v423_v50 = vpop.f32.mrf.mxu1 }
 0x12c   :  { %v424_v17 = vadd.f32 %v423_v50, %v280_v36 }
 0x12d   :  { %v282_v37 = vpop.f32.mrf.mxu0  ;;  %v425_v58 = vpop.f32.mrf.mxu1 }
 0x12e   :  { %v426_v25 = vadd.f32 %v425_v58, %v282_v37 }
 0x12f   :  { %v286_v39 = vpop.f32.mrf.mxu0  ;;  %v429_v5 = vpop.f32.mrf.mxu1 }
 0x130   :  { %v430_v33 = vadd.f32 %v429_v5, %v286_v39 }
 0x131   :  { %v288_v43 = vpop.f32.mrf.mxu0  ;;  %v431_v18 = vpop.f32.mrf.mxu1 }
 0x132   :  { %v432_v40 = vadd.f32 %v431_v18, %v288_v43 }
 0x133   :  { %v1596_v46 = vpop.f32.mrf.mxu0  ;;  %v433_v34 = vpop.f32.mrf.mxu1 }
 0x135   :  { %v1601_v51 = vpop.f32.mrf.mxu0  ;;  %v435_v43 = vpop.f32.mrf.mxu1 }
 0x13f   :  { %v577_v54 = vpop.f32.mrf.mxu0 }
 0x140   :  { %v606_v56 = vadd.f32 %v577_v54, %v410_v52 }
 0x141   :  { %v579_v59 = vpop.f32.mrf.mxu0 }
 0x142   :  { %v1608_v61 = vadd.f32 %v1603_v53, %v606_v56  ;;  %v607_v62 = vadd.f32 %v579_v59, %v412_v55 }
 0x143   :  { %v581_v63 = vpop.f32.mrf.mxu0 }
 0x144   :  { %v654_v2 = vmul.f32 0.044715, %v1608_v61  ;;  %v1612_v3 = vadd.f32 %v1605_v57, %v607_v62  ;;  %v608_v4 = vadd.f32 %v581_v63, %v414_v60  ;;  %v434_v60 = vadd.f32 %v433_v34, %v1596_v46 }
 0x145   :  { %v583_v6 = vpop.f32.mrf.mxu0 }
 0x146   :  { %v666_v7 = vmul.f32 %v654_v2, %v1608_v61  ;;  %v655_v8 = vmul.f32 0.044715, %v1612_v3  ;;  %v1617_v9 = vadd.f32 %v1603_v53, %v608_v4  ;;  %v609_v10 = vadd.f32 %v583_v6, %v416_v1 }
 0x147   :  { %v587_v12 = vpop.f32.mrf.mxu0 }
 0x148   :  { %v678_v14 = vmul.f32 %v666_v7, %v1608_v61  ;;  %v667_v15 = vmul.f32 %v655_v8, %v1612_v3  ;;  %v656_v16 = vmul.f32 0.044715, %v1617_v9  ;;  %v1623_v19 = vadd.f32 %v1605_v57, %v609_v10 }
 0x149   :  { %v610_v20 = vadd.f32 %v587_v12, %v420_v11  ;;  %v589_v0 = vpop.f32.mrf.mxu0  ;;  %v436_v7 = vadd.f32 %v435_v43, %v1601_v51  ;;  %v644_v43 = vmul.f32 0.5, %v1617_v9 }
 0x14a   :  { %v690_v21 = vadd.f32 %v678_v14, %v1608_v61  ;;  %v668_v22 = vmul.f32 %v656_v16, %v1617_v9  ;;  %v611_v23 = vadd.f32 %v589_v0, %v422_v13  ;;  %v679_v24 = vmul.f32 %v667_v15, %v1612_v3 }
 0x14b   :  { %v657_v26 = vmul.f32 0.044715, %v1623_v19  ;;  %v1630_v27 = vadd.f32 %v1603_v53, %v610_v20  ;;  %v591_v28 = vpop.f32.mrf.mxu0 }
 0x14c   :  { %v702_v29 = vmul.f32 0.7978846, %v690_v21  ;;  %v680_v30 = vmul.f32 %v668_v22, %v1617_v9  ;;  %v1634_v31 = vadd.f32 %v1605_v57, %v611_v23  ;;  %v612_v32 = vadd.f32 %v591_v28, %v424_v17 }
 0x14d   :  { %v669_v35 = vmul.f32 %v657_v26, %v1623_v19  ;;  %v658_v36 = vmul.f32 0.044715, %v1630_v27  ;;  %v593_v37 = vpop.f32.mrf.mxu0  ;;  %v691_v38 = vadd.f32 %v679_v24, %v1612_v3 }
 0x14e   :  { %v692_v41 = vadd.f32 %v680_v30, %v1617_v9  ;;  %v659_v42 = vmul.f32 0.044715, %v1634_v31  ;;  %v1642_v44 = vadd.f32 %v1603_v53, %v612_v32  ;;  %1323 = vtanh.f32 %v702_v29 }
 0x14f   :  { %v613_v45 = vadd.f32 %v593_v37, %v426_v25  ;;  %v597_v47 = vpop.f32.mrf.mxu0  ;;  %v681_v39 = vmul.f32 %v669_v35, %v1623_v19  ;;  %v703_v48 = vmul.f32 0.7978846, %v691_v38  ;;  %v670_v55 = vmul.f32 %v658_v36, %v1630_v27 }
 0x150   :  { %v704_v49 = vmul.f32 0.7978846, %v692_v41  ;;  %v671_v50 = vmul.f32 %v659_v42, %v1634_v31  ;;  %v660_v52 = vmul.f32 0.044715, %v1642_v44  ;;  %v614_v54 = vadd.f32 %v597_v47, %v430_v33 }
 0x151   :  { %v1649_v56 = vadd.f32 %v1605_v57, %v613_v45  ;;  %v599_v58 = vpop.f32.mrf.mxu0  ;;  %v693_v59 = vadd.f32 %v681_v39, %v1623_v19  ;;  %1325 = vtanh.f32 %v703_v48  ;;  %v682_v14 = vmul.f32 %v670_v55, %v1630_v27 }
 0x152   :  { %1327 = vtanh.f32 %v704_v49  ;;  %v1654_v62 = vadd.f32 %v1603_v53, %v614_v54  ;;  %v615_v63 = vadd.f32 %v599_v58, %v432_v40  ;;  %v672_v1 = vmul.f32 %v660_v52, %v1642_v44 }
 0x153   :  { %v661_v2 = vmul.f32 0.044715, %v1649_v56  ;;  %v601_v4 = vpop.f32.mrf.mxu0  ;;  %v705_v5 = vmul.f32 0.7978846, %v693_v59  ;;  %v683_v6 = vmul.f32 %v671_v50, %v1634_v31  ;;  %v694_v0 = vadd.f32 %v682_v14, %v1630_v27 }
 0x154   :  { %v662_v8 = vmul.f32 0.044715, %v1654_v62  ;;  %v1662_v10 = vadd.f32 %v1605_v57, %v615_v63  ;;  %v616_v46 = vadd.f32 %v601_v4, %v434_v60  ;;  %v684_v20 = vmul.f32 %v672_v1, %v1642_v44 }
 0x155   :  { %v673_v11 = vmul.f32 %v661_v2, %v1649_v56  ;;  %v603_v12 = vpop.f32.mrf.mxu0  ;;  %1329 = vtanh.f32 %v705_v5  ;;  %v695_v13 = vadd.f32 %v683_v6, %v1634_v31  ;;  %v706_v26 = vmul.f32 0.7978846, %v694_v0 }
 0x156   :  { %v663_v15 = vmul.f32 0.044715, %v1662_v10  ;;  %v1669_v16 = vadd.f32 %v1603_v53, %v616_v46  ;;  %v617_v51 = vadd.f32 %v603_v12, %v436_v7  ;;  %v674_v21 = vmul.f32 %v662_v8, %v1654_v62 }
 0x157   :  { %v685_v17 = vmul.f32 %v673_v11, %v1649_v56  ;;  %v707_v18 = vmul.f32 0.7978846, %v695_v13  ;;  %v696_v25 = vadd.f32 %v684_v20, %v1642_v44  ;;  %v643_v59 = vmul.f32 0.5, %v1612_v3 }
 0x158   :  { %v675_v22 = vmul.f32 %v663_v15, %v1662_v10  ;;  %v664_v23 = vmul.f32 0.044715, %v1669_v16  ;;  %v1678_v24 = vadd.f32 %v1605_v57, %v617_v51  ;;  %v686_v36 = vmul.f32 %v674_v21, %v1654_v62 }
 0x159   :  { %v697_v53 = vadd.f32 %v685_v17, %v1649_v56  ;;  %1331 = vtanh.f32 %v707_v18  ;;  %v708_v33 = vmul.f32 0.7978846, %v696_v25  ;;  %v645_v60 = vmul.f32 0.5, %v1623_v19 }
 0x15a   :  { %v676_v28 = vmul.f32 %v664_v23, %v1669_v16  ;;  %v665_v29 = vmul.f32 0.044715, %v1678_v24  ;;  %v687_v30 = vmul.f32 %v675_v22, %v1662_v10  ;;  %1333 = vtanh.f32 %v706_v26 }
 0x15b   :  { %v709_v32 = vmul.f32 0.7978846, %v697_v53  ;;  %v1324_v34 = vpop.eup %1323  ;;  %v698_v45 = vadd.f32 %v686_v36, %v1654_v62  ;;  %v642_v1 = vmul.f32 0.5, %v1608_v61  ;;  %v647_v13 = vmul.f32 0.5, %v1634_v31 }
 0x15c   :  { %v677_v35 = vmul.f32 %v665_v29, %v1678_v24  ;;  %v699_v57 = vadd.f32 %v687_v30, %v1662_v10  ;;  %v688_v37 = vmul.f32 %v676_v28, %v1669_v16  ;;  %v726_v55 = vadd.f32 1.0, %v1324_v34 }
 0x15d   :  { %1335 = vtanh.f32 %v709_v32  ;;  %v710_v50 = vmul.f32 0.7978846, %v698_v45  ;;  %v649_v61 = vmul.f32 0.5, %v1649_v56  ;;  %v646_v15 = vmul.f32 0.5, %v1630_v27 }
 0x15e   :  { %v1326_v38 = vpop.eup %1325  ;;  %1337 = vtanh.f32 %v708_v33  ;;  %v689_v40 = vmul.f32 %v677_v35, %v1678_v24  ;;  %v711_v41 = vmul.f32 0.7978846, %v699_v57  ;;  %v700_v47 = vadd.f32 %v688_v37, %v1669_v16 }
 0x15f   :  { %v1328_v42 = vpop.eup %1327  ;;  %v727_v49 = vadd.f32 1.0, %v1326_v38  ;;  %v738_v7 = vmul.f32 %v726_v55, %v642_v1  ;;  %v648_v51 = vmul.f32 0.5, %v1642_v44  ;;  %v651_v56 = vmul.f32 0.5, %v1662_v10  ;;  %v1171_v10 = vld [vmem:[%s1735_s6] ss:$0 sm:$0xff] }
 0x160   :  { %v728_v39 = vadd.f32 1.0, %v1328_v42  ;;  %v701_v48 = vadd.f32 %v689_v40, %v1678_v24  ;;  %1339 = vtanh.f32 %v711_v41  ;;  %v712_v52 = vmul.f32 0.7978846, %v700_v47 }
 0x161   :  { %1341 = vtanh.f32 %v710_v50  ;;  %v739_v4 = vmul.f32 %v727_v49, %v643_v59  ;;  %v653_v27 = vmul.f32 0.5, %v1678_v24  ;;  %v652_v30 = vmul.f32 0.5, %v1669_v16 }
 0x162   :  { %v1330_v54 = vpop.eup %1329  ;;  %v713_v58 = vmul.f32 0.7978846, %v701_v48  ;;  %v740_v2 = vmul.f32 %v728_v39, %v644_v43  ;;  %v650_v35 = vmul.f32 0.5, %v1654_v62 }
 0x163   :  { %v729_v63 = vadd.f32 1.0, %v1330_v54 }
 0x164   :  { %1343 = vtanh.f32 %v713_v58  ;;  %v750_v9 = vpack.c.bf16 %v740_v2, %v738_v7 }
 0x165   :  { %v741_v5 = vmul.f32 %v729_v63, %v645_v60  ;;  %1345 = vtanh.f32 %v712_v52 }
 0x166   :  { %v1332_v6 = vpop.eup %1331 }
 0x167   :  { %v751_v8 = vpack.c.bf16 %v741_v5, %v739_v4  ;;  %v1334_v46 = vpop.eup %1333  ;;  %v731_v11 = vadd.f32 1.0, %v1332_v6 }
 0x168   :  { %v730_v3 = vadd.f32 1.0, %v1334_v46 }
 0x169   :  { %923 = vmatprep.mubr.bf16.mxu1 %v751_v8  ;;  %v743_v20 = vmul.f32 %v731_v11, %v647_v13 }
 0x16a   :  { %v1336_v12 = vpop.eup %1335  ;;  %924 = vmatmul.mubr.bf16.vlgmr.msra.gmra.mxu1 %v750_v9  ;;  %v742_v21 = vmul.f32 %v730_v3, %v646_v15 }
 0x16b   :  { %v1338_v19 = vpop.eup %1337  ;;  %v733_v14 = vadd.f32 1.0, %v1336_v12 }
 0x16c   :  { %v732_v17 = vadd.f32 1.0, %v1338_v19 }
 0x16d   :  { %v1340_v18 = vpop.eup %1339  ;;  %v745_v0 = vmul.f32 %v733_v14, %v649_v61 }
 0x16e   :  { %v744_v22 = vmul.f32 %v732_v17, %v648_v51  ;;  %v1342_v53 = vpop.eup %1341  ;;  %v735_v26 = vadd.f32 1.0, %v1340_v18 }
 0x16f   :  { %v753_v23 = vpack.c.bf16 %v745_v0, %v743_v20  ;;  %v734_v44 = vadd.f32 1.0, %v1342_v53 }
 0x170   :  { %v752_v25 = vpack.c.bf16 %v744_v22, %v742_v21  ;;  %v747_v33 = vmul.f32 %v735_v26, %v651_v56 }
 0x171   :  { %v1344_v28 = vpop.eup %1343  ;;  %931 = vmatprep.mubr.bf16.mxu1 %v753_v23  ;;  %v746_v37 = vmul.f32 %v734_v44, %v650_v35 }
 0x172   :  { %v1346_v31 = vpop.eup %1345  ;;  %932 = vmatmul.mubr.bf16.gmra.mxu1 %v752_v25  ;;  %v737_v29 = vadd.f32 1.0, %v1344_v28 }
 0x173   :  { %v736_v32 = vadd.f32 1.0, %v1346_v31 }
 0x174   :  { %v749_v34 = vmul.f32 %v737_v29, %v653_v27 }
 0x175   :  { %v748_v57 = vmul.f32 %v736_v32, %v652_v30 }
 0x176   :  { %v755_v36 = vpack.c.bf16 %v749_v34, %v747_v33 }
 0x177   :  { %v754_v38 = vpack.c.bf16 %v748_v57, %v746_v37 }
 0x178   :  { %939 = vmatprep.mubr.bf16.mxu1 %v755_v36 }
 0x17a   :  { %940 = vmatmul.mubr.bf16.gmra.mxu1 %v754_v38 }
 0x22a   :  { %v1206_v40 = vpop.f32.mrf.mxu1 }
 0x22c   :  { %v1207_v24 = vpop.f32.mrf.mxu1 }
 0x22d   :  { %v1208_v41 = vadd.f32 %v1207_v24, %v1206_v40 }
 0x22e   :  { %v1209_v42 = vpop.f32.mrf.mxu1 }
 0x22f   :  { %v926_v16 = vadd.f32 %v1208_v41, %v1171_v10 }
 0x230   :  { %v1210_v45 = vpop.f32.mrf.mxu1 }
 0x231   :  { %v1211_v47 = vadd.f32 %v1210_v45, %v1209_v42  ;;  %v954_v39 = vmul.f32 0.044715, %v926_v16  ;;  %v948_v56 = vmul.f32 0.5, %v926_v16 }
 0x232   :  { %v1212_v48 = vpop.f32.mrf.mxu1 }
 0x233   :  { %v929_v62 = vadd.f32 %v1211_v47, %v1171_v10  ;;  %v960_v49 = vmul.f32 %v954_v39, %v926_v16 }
 0x234   :  { %v1213_v50 = vpop.f32.mrf.mxu1 }
 0x235   :  { %v1214_v52 = vadd.f32 %v1213_v50, %v1212_v48  ;;  %v966_v54 = vmul.f32 %v960_v49, %v926_v16  ;;  %v955_v43 = vmul.f32 0.044715, %v929_v62  ;;  %v949_v35 = vmul.f32 0.5, %v929_v62 }
 0x236   :  { %v1215_v55 = vpop.f32.mrf.mxu1 }
 0x237   :  { %v934_v58 = vadd.f32 %v1214_v52, %v1171_v10  ;;  %v972_v59 = vadd.f32 %v966_v54, %v926_v16  ;;  %v961_v60 = vmul.f32 %v955_v43, %v929_v62 }
 0x238   :  { %v1216_v63 = vpop.f32.mrf.mxu1 }
 0x239   :  { %v1217_v1 = vadd.f32 %v1216_v63, %v1215_v55  ;;  %v978_v2 = vmul.f32 0.7978846, %v972_v59  ;;  %v967_v4 = vmul.f32 %v961_v60, %v929_v62  ;;  %v956_v6 = vmul.f32 0.044715, %v934_v58 }
 0x23a   :  { %v1218_v5 = vpop.f32.mrf.mxu1  ;;  %v950_v40 = vmul.f32 0.5, %v934_v58 }
 0x23b   :  { %v1708_v7 = vadd.f32 %v1217_v1, %v1171_v10  ;;  %1347 = vtanh.f32 %v978_v2  ;;  %v973_v8 = vadd.f32 %v967_v4, %v929_v62  ;;  %v962_v9 = vmul.f32 %v956_v6, %v934_v58 }
 0x23c   :  { %v1219_v46 = vpop.f32.mrf.mxu1 }
 0x23d   :  { %v1220_v11 = vadd.f32 %v1219_v46, %v1218_v5  ;;  %v979_v12 = vmul.f32 0.7978846, %v973_v8  ;;  %v957_v3 = vmul.f32 0.044715, %v1708_v7  ;;  %v968_v13 = vmul.f32 %v962_v9, %v934_v58 }
 0x23e   :  { %v1221_v19 = vpop.f32.mrf.mxu1  ;;  %v951_v54 = vmul.f32 0.5, %v1708_v7 }
 0x23f   :  { %v942_v61 = vadd.f32 %v1220_v11, %v1171_v10  ;;  %1349 = vtanh.f32 %v979_v12  ;;  %v974_v15 = vadd.f32 %v968_v13, %v934_v58  ;;  %v963_v51 = vmul.f32 %v957_v3, %v1708_v7 }
 0x240   :  { %v1222_v14 = vpop.f32.mrf.mxu1 }
 0x241   :  { %v1223_v17 = vadd.f32 %v1222_v14, %v1221_v19  ;;  %v958_v18 = vmul.f32 0.044715, %v942_v61  ;;  %v980_v20 = vmul.f32 0.7978846, %v974_v15  ;;  %v969_v22 = vmul.f32 %v963_v51, %v1708_v7 }
 0x242   :  { %v952_v42 = vmul.f32 0.5, %v942_v61 }
 0x243   :  { %v945_v0 = vadd.f32 %v1223_v17, %v1171_v10  ;;  %v964_v21 = vmul.f32 %v958_v18, %v942_v61  ;;  %1351 = vtanh.f32 %v980_v20  ;;  %v975_v31 = vadd.f32 %v969_v22, %v1708_v7 }
 0x245   :  { %v970_v23 = vmul.f32 %v964_v21, %v942_v61  ;;  %v959_v53 = vmul.f32 0.044715, %v945_v0  ;;  %v981_v34 = vmul.f32 0.7978846, %v975_v31  ;;  %v953_v48 = vmul.f32 0.5, %v945_v0 }
 0x247   :  { %v976_v25 = vadd.f32 %v970_v23, %v942_v61  ;;  %v965_v26 = vmul.f32 %v959_v53, %v945_v0 }
 0x248   :  { %v1348_v28 = vpop.eup %1347 }
 0x249   :  { %v990_v27 = vadd.f32 1.0, %v1348_v28  ;;  %v982_v29 = vmul.f32 0.7978846, %v976_v25  ;;  %v971_v44 = vmul.f32 %v965_v26, %v945_v0 }
 0x24b   :  { %v996_v30 = vmul.f32 %v990_v27, %v948_v56  ;;  %1353 = vtanh.f32 %v982_v29  ;;  %v977_v32 = vadd.f32 %v971_v44, %v945_v0  ;;  %v1188_v29 = vld [vmem:[%s1736_s7] ss:$0 sm:$0xff]  ;;  %s1509_s7 = smov [#allocation11]  }
 0x24c   :  { %v1350_v33 = vpop.eup %1349 }
 0x24d   :  { %1004 = vadd.xlane.f32.xlu0 %v996_v30  ;;  %v991_v57 = vadd.f32 1.0, %v1350_v33  ;;  %v983_v36 = vmul.f32 0.7978846, %v977_v32  ;;  %v1189_v32 = vld [vmem:[%s1737_s8] ss:$0 sm:$0xff]  ;;  %s1109_s8 = sshll.u32 %s1509_s7, 4  ;;  %s1110_s8 = int_to_ptr.vmem [resolvable:$true] %s1109_s8 }
 0x24e   :  { %s1471_s20 = scalar_lea.vmem %s1110_s8, 768  ;;  %p1476_p12 = scmp.lt.s32.totalorder %s1110_s8, %s1110_s8 }
 0x24f   :  { %v997_v37 = vmul.f32 %v991_v57, %v949_v35  ;;  %1355 = vtanh.f32 %v983_v36  ;;  %p1472_p11 = scmp.ne.s32.totalorder %s1110_s8, %s1471_s20  ;;  %p1477_p13 = scmp.lt.s32.totalorder %s1471_s20, %s1471_s20 }
 0x250   :  { %1357 = vtanh.f32 %v981_v34  ;;  %v1352_v38 = vpop.eup %1351 }
 0x251   :  { %1006 = vadd.xlane.f32.xlu1 %v997_v37  ;;  %v992_v10 = vadd.f32 1.0, %v1352_v38  ;;  %p1478_p0 = por %p1477_p13, %p1476_p12 }
 0x253   :  { %v998_v24 = vmul.f32 %v992_v10, %v950_v40  ;;  %p1479_p1 = pnand %p1478_p0, %p1472_p11 }
 0x255   :  { %1008 = vadd.xlane.f32.xlu1 %v998_v24 }
 0x258   :  { %v1354_v41 = vpop.eup %1353 }
 0x259   :  { %v994_v16 = vadd.f32 1.0, %v1354_v41 }
 0x25b   :  { %v1000_v45 = vmul.f32 %v994_v16, %v952_v42 }
 0x25c   :  { %v1356_v47 = vpop.eup %1355 }
 0x25d   :  { %v1358_v39 = vpop.eup %1357  ;;  %1012 = vadd.xlane.f32.xlu1 %v1000_v45  ;;  %v995_v62 = vadd.f32 1.0, %v1356_v47 }
 0x25e   :  { %v993_v50 = vadd.f32 1.0, %v1358_v39 }
 0x25f   :  { %v1001_v49 = vmul.f32 %v995_v62, %v953_v48 }
 0x260   :  { %v999_v43 = vmul.f32 %v993_v50, %v951_v54 }
 0x261   :  { %v1015_v52 = vsel %vm1014_vm0, %v1001_v49, 0.0 }
 0x262   :  { %1016 = vadd.xlane.f32.xlu0 %v1015_v52 }
 0x266   :  { %1010 = vadd.xlane.f32.xlu0 %v999_v43 }
 0x2d6   :  { %v1005_v55 = vpop.xlane.xlu0 %1004 }
 0x2d7   :  { %v1019_v58 = vmul.f32 0.0078125, %v1005_v55 }
 0x2d9   :  { %v1025_v59 = vsub.f32 %v996_v30, %v1019_v58 }
 0x2da   :  { %v1007_v60 = vpop.xlane.xlu1 %1006 }
 0x2db   :  { %v1020_v63 = vmul.f32 0.0078125, %v1007_v60  ;;  %v1031_v1 = vmul.f32 %v1025_v59, %v1025_v59 }
 0x2dd   :  { %v1026_v2 = vsub.f32 %v997_v37, %v1020_v63  ;;  %1037 = vadd.xlane.f32.xlu0 %v1031_v1 }
 0x2de   :  { %v1009_v4 = vpop.xlane.xlu1 %1008 }
 0x2df   :  { %v1032_v5 = vmul.f32 %v1026_v2, %v1026_v2  ;;  %v1021_v6 = vmul.f32 0.0078125, %v1009_v4 }
 0x2e1   :  { %1039 = vadd.xlane.f32.xlu1 %v1032_v5  ;;  %v1027_v8 = vsub.f32 %v998_v24, %v1021_v6 }
 0x2e3   :  { %v1033_v46 = vmul.f32 %v1027_v8, %v1027_v8 }
 0x2e5   :  { %1041 = vadd.xlane.f32.xlu0 %v1033_v46 }
 0x2e6   :  { %v1013_v9 = vpop.xlane.xlu1 %1012 }
 0x2e7   :  { %v1023_v11 = vmul.f32 0.0078125, %v1013_v9 }
 0x2e9   :  { %v1029_v7 = vsub.f32 %v1000_v45, %v1023_v11 }
 0x2eb   :  { %v1017_v12 = vpop.xlane.xlu0 %1016  ;;  %v1035_v3 = vmul.f32 %v1029_v7, %v1029_v7 }
 0x2ec   :  { %v1024_v19 = vmul.f32 0.0078125, %v1017_v12 }
 0x2ed   :  { %1045 = vadd.xlane.f32.xlu0 %v1035_v3 }
 0x2ee   :  { %v1030_v14 = vsub.f32 %v1001_v49, %v1024_v19 }
 0x2ef   :  { %v1011_v13 = vpop.xlane.xlu0 %1010 }
 0x2f0   :  { %v1022_v61 = vmul.f32 0.0078125, %v1011_v13  ;;  %v1036_v17 = vmul.f32 %v1030_v14, %v1030_v14 }
 0x2f2   :  { %v1028_v15 = vsub.f32 %v999_v43, %v1022_v61  ;;  %v1047_v18 = vsel %vm1014_vm0, %v1036_v17, 0.0 }
 0x2f4   :  { %v1034_v51 = vmul.f32 %v1028_v15, %v1028_v15 }
 0x2f6   :  { %1043 = vadd.xlane.f32.xlu1 %v1034_v51 }
 0x2fa   :  { %1048 = vadd.xlane.f32.xlu1 %v1047_v18 }
 0x366   :  { %v1038_v20 = vpop.xlane.xlu0 %1037 }
 0x367   :  { %v1050_v0 = vmul.f32 0.0078125, %v1038_v20 }
 0x369   :  { %v1056_v21 = vadd.f32 1e-05, %v1050_v0 }
 0x36a   :  { %v1040_v22 = vpop.xlane.xlu1 %1039 }
 0x36b   :  { %1359 = vrsqrt.f32 %v1056_v21  ;;  %v1051_v23 = vmul.f32 0.0078125, %v1040_v22 }
 0x36d   :  { %v1057_v53 = vadd.f32 1e-05, %v1051_v23 }
 0x36e   :  { %v1042_v25 = vpop.xlane.xlu0 %1041 }
 0x36f   :  { %1361 = vrsqrt.f32 %v1057_v53  ;;  %v1052_v26 = vmul.f32 0.0078125, %v1042_v25 }
 0x371   :  { %v1058_v28 = vadd.f32 1e-05, %v1052_v26 }
 0x373   :  { %1363 = vrsqrt.f32 %v1058_v28 }
 0x376   :  { %v1046_v31 = vpop.xlane.xlu0 %1045 }
 0x377   :  { %v1054_v56 = vmul.f32 0.0078125, %v1046_v31 }
 0x378   :  { %v1360_v27 = vpop.eup %1359 }
 0x379   :  { %v1068_v44 = vmul.f32 %v1360_v27, %v1025_v59  ;;  %v1060_v30 = vadd.f32 1e-05, %v1054_v56 }
 0x37b   :  { %v1080_v33 = vmul.f32 %v1188_v29, %v1068_v44  ;;  %1365 = vrsqrt.f32 %v1060_v30 }
 0x37c   :  { %v1362_v34 = vpop.eup %1361 }
 0x37d   :  { %v1069_v35 = vmul.f32 %v1362_v34, %v1026_v2  ;;  %v1092_v57 = vadd.f32 %v1189_v32, %v1080_v33 }
 0x37f   :  { %v1081_v36 = vmul.f32 %v1188_v29, %v1069_v35  ;;  %v1044_v37 = vpop.xlane.xlu1 %1043  ;;  %1098 = vst [vmem:[#allocation11] sm:$0xff] %v1092_v57 }
 0x380   :  { %v1053_v38 = vmul.f32 0.0078125, %v1044_v37  ;;  %v1364_v40 = vpop.eup %1363 }
 0x381   :  { %v1093_v10 = vadd.f32 %v1189_v32, %v1081_v36  ;;  %v1070_v24 = vmul.f32 %v1364_v40, %v1027_v8 }
 0x382   :  { %v1059_v41 = vadd.f32 1e-05, %v1053_v38 }
 0x383   :  { %v1049_v42 = vpop.xlane.xlu1 %1048  ;;  %1099 = vst [vmem:[#allocation11 + $0x8] sm:$0xff] %v1093_v10  ;;  %v1082_v16 = vmul.f32 %v1188_v29, %v1070_v24 }
 0x384   :  { %1367 = vrsqrt.f32 %v1059_v41  ;;  %v1055_v45 = vmul.f32 0.0078125, %v1049_v42 }
 0x385   :  { %v1094_v39 = vadd.f32 %v1189_v32, %v1082_v16 }
 0x386   :  { %v1061_v47 = vadd.f32 1e-05, %v1055_v45 }
 0x387   :  { %1100 = vst [vmem:[#allocation11 + $0x10] sm:$0xff] %v1094_v39 }
 0x388   :  { %v1366_v48 = vpop.eup %1365  ;;  %1369 = vrsqrt.f32 %v1061_v47 }
 0x389   :  { %v1072_v62 = vmul.f32 %v1366_v48, %v1029_v7 }
 0x38b   :  { %v1084_v49 = vmul.f32 %v1188_v29, %v1072_v62 }
 0x38d   :  { %v1096_v50 = vadd.f32 %v1189_v32, %v1084_v49 }
 0x38f   :  { %1102 = vst [vmem:[#allocation11 + $0x20] sm:$0xff] %v1096_v50 }
 0x391   :  { %v1368_v52 = vpop.eup %1367 }
 0x392   :  { %v1071_v54 = vmul.f32 %v1368_v52, %v1028_v15 }
 0x394   :  { %v1083_v43 = vmul.f32 %v1188_v29, %v1071_v54 }
 0x395   :  { %v1370_v55 = vpop.eup %1369 }
 0x396   :  { %v1073_v58 = vmul.f32 %v1370_v55, %v1030_v14  ;;  %v1095_v59 = vadd.f32 %v1189_v32, %v1083_v43 }
 0x398   :  { %v1085_v60 = vmul.f32 %v1188_v29, %v1073_v58  ;;  %1101 = vst [vmem:[#allocation11 + $0x18] sm:$0xff] %v1095_v59 }
 0x39a   :  { %v1097_v63 = vadd.f32 %v1189_v32, %v1085_v60 }
 0x39c   :  { %1103 = vst [vmem:[#allocation11 + $0x28] sm:$0x1] %v1097_v63 }
 0x39d   :  { %1482 = shalt.err (!%p1479_p1)
}
 0x39e   :  { %1115 = dma.vmem_to_hbm [thread:$0]  %s1110_s8, 768, %s1738_s9, [#allocation4], %s1501_s14, %s1501_s14, %s1502_s15  }
 0x39f   :  { %1497 = dma.done.wait [#allocation4], 768  }
 0x3a0   :  { %1498 = vsyncadd [#allocation4], 4294966528 }
 0x3a1   :  { %1119 = vsyncpa [#allocation3], 1 }
 0x3a2   :  { %1120 = vsyncpa [#allocation6], 1 }
 0x3a3   :  { %1121 = vsyncpa [#allocation9], 1 }
 0x3a4   :  { %1122 = vsyncpa [#allocation4], 1 }

</bundles_post_ra>
